<compile_context>
chip_gen: v7x
topology: tpu7x:2x2x1
jax: 0.10.0
libtpu: 0.0.40
codegen_flags: <defaults>
</compile_context>

<pallas_src>
import functools

import jax
import jax.numpy as jnp
from jax.experimental import pallas as pl
from jax.experimental.pallas import tpu as pltpu

# ---- tiny synthetic BERT config (stands in for config.BERT_PATH weights) ----
HIDDEN = 128          # BERT hidden size (768 in the real checkpoint)
HEADS = 4
HEAD_DIM = HIDDEN // HEADS
INTER = 256           # FFN intermediate size
LAYERS = 2
VOCAB = 100
MAX_POS = 32
TYPE_VOCAB = 2
LN_EPS = 1e-12
OUT_PAD = 128         # classifier N padded to a full lane width

# 32 MiB scoped VMEM: raises v5e's 16 MiB default, matches v6e default and
# stays under v7x's 64 MiB physical per-TC budget.
VMEM_LIMIT = 32 * 1024 * 1024


def _tile(dim, pref, align):
    """Largest tile <= pref that divides `dim` and is a multiple of `align`
    (falls back to the full dim, which is always legal)."""
    if dim <= pref:
        return dim
    t = (pref // align) * align
    while t >= align:
        if dim % t == 0:
            return t
        t -= align
    return dim


def _gelu(y):
    # tanh-approx GELU (HF "gelu_new"); exact-erf variant differs only ~1e-3.
    return 0.5 * y * (1.0 + jnp.tanh(0.7978845608028654 * (y + 0.044715 * y * y * y)))


def _sigmoid(y):
    # exact, numerically stable sigmoid via tanh (EUP op)
    return 0.5 * (jnp.tanh(0.5 * y) + 1.0)


def _layernorm(y, g, b):
    mean = jnp.mean(y, axis=-1, keepdims=True)
    c = y - mean
    var = jnp.mean(c * c, axis=-1, keepdims=True)
    return c * jax.lax.rsqrt(var + LN_EPS) * g + b


# --------------------------- Pallas kernels --------------------------------
def _matmul_bias_kernel(x_ref, w_ref, b_ref, o_ref, *, activation):
    """y = act(x @ w + b); bf16 MXU operands, f32 accumulate/epilogue."""
    y = jnp.dot(x_ref[...].astype(jnp.bfloat16), w_ref[...],
                preferred_element_type=jnp.float32) + b_ref[...]
    if activation == "gelu":
        y = _gelu(y)
    elif activation == "tanh":
        y = jnp.tanh(y)
    o_ref[...] = y.astype(o_ref.dtype)


def linear(x, w, b, activation="none"):
    """Row/N-tiled matmul with a parallel grid (double-buffered DMA)."""
    rows, k = x.shape
    n = w.shape[1]
    tm = _tile(rows, 256, 8)
    tn = _tile(n, 256, 128)
    kern = functools.partial(_matmul_bias_kernel, activation=activation)
    return pl.pallas_call(
        kern,
        out_shape=jax.ShapeDtypeStruct((rows, n), jnp.float32),
        grid=(rows // tm, n // tn),
        in_specs=[pl.BlockSpec((tm, k), lambda i, j: (i, 0)),
                  pl.BlockSpec((k, tn), lambda i, j: (0, j)),
                  pl.BlockSpec((1, tn), lambda i, j: (0, j))],
        out_specs=pl.BlockSpec((tm, tn), lambda i, j: (i, j)),
        compiler_params=pltpu.CompilerParams(
            dimension_semantics=("parallel", "parallel"),
            vmem_limit_bytes=VMEM_LIMIT),
    )(x, w, b.reshape(1, n))


def _ln_kernel(x_ref, g_ref, b_ref, o_ref):
    """LayerNorm(x) * gamma + beta (no residual) — used for embeddings."""
    o_ref[...] = _layernorm(x_ref[...].astype(jnp.float32),
                            g_ref[...], b_ref[...]).astype(o_ref.dtype)


def layernorm(x, gamma, beta):
    rows, h = x.shape
    tm = _tile(rows, 256, 8)
    return pl.pallas_call(
        _ln_kernel,
        out_shape=jax.ShapeDtypeStruct((rows, h), jnp.float32),
        grid=(rows // tm,),
        in_specs=[pl.BlockSpec((tm, h), lambda i: (i, 0)),
                  pl.BlockSpec((1, h), lambda i: (0, 0)),
                  pl.BlockSpec((1, h), lambda i: (0, 0))],
        out_specs=pl.BlockSpec((tm, h), lambda i: (i, 0)),
        compiler_params=pltpu.CompilerParams(
            dimension_semantics=("parallel",),
            vmem_limit_bytes=VMEM_LIMIT),
    )(x, gamma.reshape(1, h), beta.reshape(1, h))


def _matmul_residual_ln_kernel(x_ref, w_ref, b_ref, r_ref, g_ref, be_ref, o_ref):
    """LayerNorm((x @ w + b) + residual) fused in the matmul epilogue."""
    y = jnp.dot(x_ref[...].astype(jnp.bfloat16), w_ref[...],
                preferred_element_type=jnp.float32) + b_ref[...]
    y = y + r_ref[...].astype(jnp.float32)
    o_ref[...] = _layernorm(y, g_ref[...], be_ref[...]).astype(o_ref.dtype)


def linear_residual_ln(x, w, b, resid, gamma, beta):
    rows, k = x.shape
    h = w.shape[1]
    tm = _tile(rows, 256, 8)
    return pl.pallas_call(
        _matmul_residual_ln_kernel,
        out_shape=jax.ShapeDtypeStruct((rows, h), jnp.float32),
        grid=(rows // tm,),
        in_specs=[pl.BlockSpec((tm, k), lambda i: (i, 0)),
                  pl.BlockSpec((k, h), lambda i: (0, 0)),
                  pl.BlockSpec((1, h), lambda i: (0, 0)),
                  pl.BlockSpec((tm, h), lambda i: (i, 0)),
                  pl.BlockSpec((1, h), lambda i: (0, 0)),
                  pl.BlockSpec((1, h), lambda i: (0, 0))],
        out_specs=pl.BlockSpec((tm, h), lambda i: (i, 0)),
        compiler_params=pltpu.CompilerParams(
            dimension_semantics=("parallel",),
            vmem_limit_bytes=VMEM_LIMIT),
    )(x, w, b.reshape(1, h), resid, gamma.reshape(1, h), beta.reshape(1, h))


def _ffn_residual_ln_kernel(x_ref, w1_ref, b1_ref, w2_ref, b2_ref,
                            r_ref, g_ref, be_ref, o_ref):
    """Fused FFN: LayerNorm(GELU(x@W1+b1)@W2 + b2 + residual).
    The rows x INTER intermediate never leaves VMEM."""
    x = x_ref[...].astype(jnp.bfloat16)
    h1 = jnp.dot(x, w1_ref[...], preferred_element_type=jnp.float32) + b1_ref[...]
    h1 = _gelu(h1)
    h2 = jnp.dot(h1.astype(jnp.bfloat16), w2_ref[...],
                 preferred_element_type=jnp.float32) + b2_ref[...]
    y = h2 + r_ref[...].astype(jnp.float32)
    o_ref[...] = _layernorm(y, g_ref[...], be_ref[...]).astype(o_ref.dtype)


def ffn_residual_ln(x, w1, b1, w2, b2, resid, gamma, beta):
    rows, h = x.shape
    inter = w1.shape[1]
    tm = _tile(rows, 256, 8)
    return pl.pallas_call(
        _ffn_residual_ln_kernel,
        out_shape=jax.ShapeDtypeStruct((rows, h), jnp.float32),
        grid=(rows // tm,),
        in_specs=[pl.BlockSpec((tm, h), lambda i: (i, 0)),
                  pl.BlockSpec((h, inter), lambda i: (0, 0)),
                  pl.BlockSpec((1, inter), lambda i: (0, 0)),
                  pl.BlockSpec((inter, h), lambda i: (0, 0)),
                  pl.BlockSpec((1, h), lambda i: (0, 0)),
                  pl.BlockSpec((tm, h), lambda i: (i, 0)),
                  pl.BlockSpec((1, h), lambda i: (0, 0)),
                  pl.BlockSpec((1, h), lambda i: (0, 0))],
        out_specs=pl.BlockSpec((tm, h), lambda i: (i, 0)),
        compiler_params=pltpu.CompilerParams(
            dimension_semantics=("parallel",),
            vmem_limit_bytes=VMEM_LIMIT),
    )(x, w1, b1.reshape(1, inter), w2, b2.reshape(1, h),
      resid, gamma.reshape(1, h), beta.reshape(1, h))


def _attention_kernel(qkv_ref, m_ref, o_ref, *, scale, heads, head_dim, hidden):
    """All heads for one batch element.  qkv block is (1, S, 3*HIDDEN) lane-dense;
    heads are static lane slices.  Scores/softmax in f32, MXU operands bf16."""
    qkv = qkv_ref[0].astype(jnp.bfloat16)            # (S, 3H)
    bias = m_ref[0]                                  # (1, S) additive mask bias
    outs = []
    for h in range(heads):
        qh = qkv[:, h * head_dim:(h + 1) * head_dim]
        kh = qkv[:, hidden + h * head_dim: hidden + (h + 1) * head_dim]
        vh = qkv[:, 2 * hidden + h * head_dim: 2 * hidden + (h + 1) * head_dim]
        # q @ k^T via dot_general trans_b — no explicit transpose of k.
        s = jax.lax.dot_general(qh, kh, (((1,), (1,)), ((), ())),
                                preferred_element_type=jnp.float32) * scale
        s = s + bias
        s = s - jnp.max(s, axis=-1, keepdims=True)
        p = jnp.exp(s)
        p = p * pl.reciprocal(jnp.sum(p, axis=-1, keepdims=True), approx=True)
        outs.append(jax.lax.dot_general(p.astype(jnp.bfloat16), vh,
                                        (((1,), (0,)), ((), ())),
                                        preferred_element_type=jnp.float32))
    # concat heads along lanes -> lane-dense (S, HIDDEN) output block
    o_ref[0] = jnp.concatenate(outs, axis=-1).astype(o_ref.dtype)


def attention(qkv, mask_bias):
    # TODO(synk): for real sequence lengths (S>=512) switch to a KV-tiled
    # flash-style loop with online softmax to bound VMEM on v7x.
    b, s, _ = qkv.shape
    kern = functools.partial(_attention_kernel, scale=1.0 / (HEAD_DIM ** 0.5),
                             heads=HEADS, head_dim=HEAD_DIM, hidden=HIDDEN)
    return pl.pallas_call(
        kern,
        out_shape=jax.ShapeDtypeStruct((b, s, HIDDEN), jnp.float32),
        grid=(b,),
        in_specs=[pl.BlockSpec((1, s, 3 * HIDDEN), lambda i: (i, 0, 0)),
                  pl.BlockSpec((1, 1, s), lambda i: (i, 0, 0))],
        out_specs=pl.BlockSpec((1, s, HIDDEN), lambda i: (i, 0, 0)),
        compiler_params=pltpu.CompilerParams(
            dimension_semantics=("parallel",),
            vmem_limit_bytes=VMEM_LIMIT),
    )(qkv, mask_bias)


def _head_kernel(cls_ref, pw_ref, pb_ref, ow_ref, ob_ref, o_ref):
    """Fused pooler + classifier + sigmoid.  Classifier N is padded to 128
    lanes so the output store is lane-dense; real logit sits in column 0."""
    x = cls_ref[...].astype(jnp.bfloat16)
    pooled = jnp.tanh(jnp.dot(x, pw_ref[...],
                              preferred_element_type=jnp.float32) + pb_ref[...])
    logits = jnp.dot(pooled.astype(jnp.bfloat16), ow_ref[...],
                     preferred_element_type=jnp.float32) + ob_ref[...]
    o_ref[...] = _sigmoid(logits).astype(o_ref.dtype)


def head(cls_x, pool_w, pool_b, out_w_pad, out_b_pad):
    bsz, h = cls_x.shape
    npad = out_w_pad.shape[1]
    return pl.pallas_call(
        _head_kernel,
        out_shape=jax.ShapeDtypeStruct((bsz, npad), jnp.float32),
        in_specs=[pl.BlockSpec((bsz, h), lambda: (0, 0)),
                  pl.BlockSpec((h, h), lambda: (0, 0)),
                  pl.BlockSpec((1, h), lambda: (0, 0)),
                  pl.BlockSpec((h, npad), lambda: (0, 0)),
                  pl.BlockSpec((1, npad), lambda: (0, 0))],
        out_specs=pl.BlockSpec((bsz, npad), lambda: (0, 0)),
        compiler_params=pltpu.CompilerParams(vmem_limit_bytes=VMEM_LIMIT),
    )(cls_x, pool_w, pool_b.reshape(1, h), out_w_pad, out_b_pad)


# ----------------------- deterministic parameter init ----------------------
def init_params(seed=0):
    key = jax.random.PRNGKey(seed)
    cnt = [0]

    def rnd(shape):
        cnt[0] += 1
        return 0.02 * jax.random.normal(jax.random.fold_in(key, cnt[0]),
                                        shape, jnp.float32)

    def w(shape):                      # MXU weight operand -> bf16 storage
        return rnd(shape).astype(jnp.bfloat16)

    zeros = lambda shape: jnp.zeros(shape, jnp.float32)
    ones = lambda shape: jnp.ones(shape, jnp.float32)

    out_w = rnd((HIDDEN, 1))
    out_w_pad = jnp.zeros((HIDDEN, OUT_PAD), jnp.float32)
    out_w_pad = out_w_pad.at[:, :1].set(out_w).astype(jnp.bfloat16)

    p = {
        "word_emb": rnd((VOCAB, HIDDEN)),
        "pos_emb": rnd((MAX_POS, HIDDEN)),
        "type_emb": rnd((TYPE_VOCAB, HIDDEN)),
        "emb_ln_g": ones((HIDDEN,)), "emb_ln_b": zeros((HIDDEN,)),
        "pool_w": w((HIDDEN, HIDDEN)), "pool_b": zeros((HIDDEN,)),
        "out_w_pad": out_w_pad,                    # nn.Linear(hidden, 1) padded to 128
        "out_b_pad": zeros((1, OUT_PAD)),
        "layers": [],
    }
    for _ in range(LAYERS):
        p["layers"].append({
            # fused QKV projection: one (H, 3H) matmul instead of three (H, H)
            "qkv_w": w((HIDDEN, 3 * HIDDEN)), "qkv_b": zeros((3 * HIDDEN,)),
            "ao_w": w((HIDDEN, HIDDEN)), "ao_b": zeros((HIDDEN,)),
            "attn_ln_g": ones((HIDDEN,)), "attn_ln_b": zeros((HIDDEN,)),
            "ff1_w": w((HIDDEN, INTER)), "ff1_b": zeros((INTER,)),
            "ff2_w": w((INTER, HIDDEN)), "ff2_b": zeros((HIDDEN,)),
            "ffn_ln_g": ones((HIDDEN,)), "ffn_ln_b": zeros((HIDDEN,)),
        })
    return p


# ------------------------------- forward ------------------------------------
def bert_forward(params, ids, mask, token_type_ids):
    """Equivalent of BERT.forward: pooled BERT output -> dropout -> Linear -> sigmoid."""
    b, s = ids.shape

    # Embedding gathers are glue (plain JAX); LN is a Pallas kernel (no fake
    # zero residual is read anymore).
    pos = jnp.arange(s)
    emb = (params["word_emb"][ids]
           + params["pos_emb"][pos][None, :, :]
           + params["type_emb"][token_type_ids])
    h = layernorm(emb.reshape(b * s, HIDDEN), params["emb_ln_g"], params["emb_ln_b"])
    # embedding dropout: eval mode => identity

    # additive attention-mask bias: 0 where attended, -10000 where padded
    bias = ((1.0 - mask.astype(jnp.float32)) * -10000.0)[:, None, :]      # (B, 1, S)

    for lp in params["layers"]:
        qkv = linear(h, lp["qkv_w"], lp["qkv_b"])                         # (B*S, 3H)
        ctx = attention(qkv.reshape(b, s, 3 * HIDDEN), bias)              # (B, S, H)
        ctx = ctx.reshape(b * s, HIDDEN)
        # attention output projection + residual + LayerNorm, fused
        h = linear_residual_ln(ctx, lp["ao_w"], lp["ao_b"], h,
                               lp["attn_ln_g"], lp["attn_ln_b"])
        # FFN (GELU) + residual + LayerNorm, fused (intermediate stays in VMEM)
        h = ffn_residual_ln(h, lp["ff1_w"], lp["ff1_b"], lp["ff2_w"], lp["ff2_b"],
                            h, lp["ffn_ln_g"], lp["ffn_ln_b"])

    # BERT pooler + self.bert_drop (eval => identity) + self.out + sigmoid,
    # fused into one tiny kernel with a lane-dense (padded) output.
    cls = h.reshape(b, s, HIDDEN)[:, 0, :]
    probs = head(cls, params["pool_w"], params["pool_b"],
                 params["out_w_pad"], params["out_b_pad"])
    return probs[:, :1]                                                   # (B, 1)


if __name__ == "__main__":
    key = jax.random.PRNGKey(0)
    B, S = 2, 8
    ids = jax.random.randint(jax.random.fold_in(key, 1), (B, S), 0, VOCAB,
                             dtype=jnp.int32)
    mask = jnp.ones((B, S), jnp.int32).at[1, 6:].set(0)        # pad last 2 of row 1
    token_type_ids = jnp.zeros((B, S), jnp.int32).at[:, 4:].set(1)

    params = init_params(seed=0)
    out = jax.jit(bert_forward)(params, ids, mask, token_type_ids)
    out = jax.block_until_ready(out)
    assert out.shape == (B, 1) and bool(jnp.all((out >= 0) & (out <= 1)))
    print("KERNEL_OK")
</pallas_src>

<mosaic_0001>
module attributes {stable_mosaic.version = 11 : i64} {
  func.func @_attention_kernel(%arg0: i32, %arg1: memref<1x8x384xf32, #tpu.memory_space<vmem>>, %arg2: memref<1x1x8xf32, #tpu.memory_space<vmem>>, %arg3: memref<1x8x128xf32, #tpu.memory_space<vmem>>) attributes {dimension_semantics = [#tpu.dimension_semantics<parallel>], iteration_bounds = array<i64: 2>, scalar_prefetch = 0 : i64, scratch_operands = 0 : i64, tpu.core_type = #tpu.core_type<tc>, window_params = [{transform_indices = @transform_0, window_bounds = array<i64: 1, 8, 384>}, {transform_indices = @transform_1, window_bounds = array<i64: 1, 1, 8>}, {transform_indices = @transform_2, window_bounds = array<i64: 1, 8, 128>}]} {
    %c0 = arith.constant 0 : index
    %c0_0 = arith.constant 0 : index
    %c0_1 = arith.constant 0 : index
    %0 = vector.load %arg1[%c0, %c0_0, %c0_1] : memref<1x8x384xf32, #tpu.memory_space<vmem>>, vector<1x8x384xf32>
    %1 = vector.shape_cast %0 : vector<1x8x384xf32> to vector<8x384xf32>
    %2 = arith.truncf %1 : vector<8x384xf32> to vector<8x384xbf16>
    %c0_2 = arith.constant 0 : index
    %c0_3 = arith.constant 0 : index
    %c0_4 = arith.constant 0 : index
    %3 = vector.load %arg2[%c0_2, %c0_3, %c0_4] : memref<1x1x8xf32, #tpu.memory_space<vmem>>, vector<1x1x8xf32>
    %4 = vector.shape_cast %3 : vector<1x1x8xf32> to vector<1x8xf32>
    %5 = vector.extract_strided_slice %2 {offsets = [0, 0], sizes = [8, 32], strides = [1, 1]} : vector<8x384xbf16> to vector<8x32xbf16>
    %6 = vector.extract_strided_slice %2 {offsets = [0, 128], sizes = [8, 32], strides = [1, 1]} : vector<8x384xbf16> to vector<8x32xbf16>
    %7 = vector.extract_strided_slice %2 {offsets = [0, 256], sizes = [8, 32], strides = [1, 1]} : vector<8x384xbf16> to vector<8x32xbf16>
    %cst = arith.constant dense<0.000000e+00> : vector<8x8xf32>
    %8 = tpu.matmul %5, %6, %cst {dimension_numbers = #tpu.dot_dimension_numbers<[1], [1], [0], [0], [0, 0, 1, 0], [], []>} : vector<8x32xbf16>, vector<8x32xbf16>, vector<8x8xf32> -> vector<8x8xf32>
    %cst_5 = arith.constant 0.176776692 : f32
    %9 = vector.broadcast %cst_5 : f32 to vector<8x8xf32>
    %10 = arith.mulf %8, %9 : vector<8x8xf32>
    %11 = vector.broadcast %4 : vector<1x8xf32> to vector<8x8xf32>
    %12 = arith.addf %10, %11 : vector<8x8xf32>
    %cst_6 = arith.constant dense<0xFF800000> : vector<8xf32>
    %13 = vector.multi_reduction <maximumf>, %12, %cst_6 [1] : vector<8x8xf32> to vector<8xf32>
    %14 = vector.shape_cast %13 : vector<8xf32> to vector<8x1xf32>
    %15 = vector.broadcast %14 : vector<8x1xf32> to vector<8x8xf32>
    %16 = arith.subf %12, %15 : vector<8x8xf32>
    %17 = math.exp %16 : vector<8x8xf32>
    %cst_7 = arith.constant dense<0.000000e+00> : vector<8xf32>
    %18 = vector.multi_reduction <add>, %17, %cst_7 [1] : vector<8x8xf32> to vector<8xf32>
    %19 = vector.shape_cast %18 : vector<8xf32> to vector<8x1xf32>
    %20 = tpu.reciprocal %19 {approx = true} : vector<8x1xf32> -> vector<8x1xf32>
    %21 = vector.broadcast %20 : vector<8x1xf32> to vector<8x8xf32>
    %22 = arith.mulf %17, %21 : vector<8x8xf32>
    %23 = arith.truncf %22 : vector<8x8xf32> to vector<8x8xbf16>
    %cst_8 = arith.constant dense<0.000000e+00> : vector<8x32xf32>
    %24 = tpu.matmul %23, %7, %cst_8 {dimension_numbers = #tpu.dot_dimension_numbers<[1], [0], [0], [1], [0, 0, 1, 1], [], []>} : vector<8x8xbf16>, vector<8x32xbf16>, vector<8x32xf32> -> vector<8x32xf32>
    %25 = vector.extract_strided_slice %2 {offsets = [0, 32], sizes = [8, 32], strides = [1, 1]} : vector<8x384xbf16> to vector<8x32xbf16>
    %26 = vector.extract_strided_slice %2 {offsets = [0, 160], sizes = [8, 32], strides = [1, 1]} : vector<8x384xbf16> to vector<8x32xbf16>
    %27 = vector.extract_strided_slice %2 {offsets = [0, 288], sizes = [8, 32], strides = [1, 1]} : vector<8x384xbf16> to vector<8x32xbf16>
    %cst_9 = arith.constant dense<0.000000e+00> : vector<8x8xf32>
    %28 = tpu.matmul %25, %26, %cst_9 {dimension_numbers = #tpu.dot_dimension_numbers<[1], [1], [0], [0], [0, 0, 1, 0], [], []>} : vector<8x32xbf16>, vector<8x32xbf16>, vector<8x8xf32> -> vector<8x8xf32>
    %cst_10 = arith.constant 0.176776692 : f32
    %29 = vector.broadcast %cst_10 : f32 to vector<8x8xf32>
    %30 = arith.mulf %28, %29 : vector<8x8xf32>
    %31 = vector.broadcast %4 : vector<1x8xf32> to vector<8x8xf32>
    %32 = arith.addf %30, %31 : vector<8x8xf32>
    %cst_11 = arith.constant dense<0xFF800000> : vector<8xf32>
    %33 = vector.multi_reduction <maximumf>, %32, %cst_11 [1] : vector<8x8xf32> to vector<8xf32>
    %34 = vector.shape_cast %33 : vector<8xf32> to vector<8x1xf32>
    %35 = vector.broadcast %34 : vector<8x1xf32> to vector<8x8xf32>
    %36 = arith.subf %32, %35 : vector<8x8xf32>
    %37 = math.exp %36 : vector<8x8xf32>
    %cst_12 = arith.constant dense<0.000000e+00> : vector<8xf32>
    %38 = vector.multi_reduction <add>, %37, %cst_12 [1] : vector<8x8xf32> to vector<8xf32>
    %39 = vector.shape_cast %38 : vector<8xf32> to vector<8x1xf32>
    %40 = tpu.reciprocal %39 {approx = true} : vector<8x1xf32> -> vector<8x1xf32>
    %41 = vector.broadcast %40 : vector<8x1xf32> to vector<8x8xf32>
    %42 = arith.mulf %37, %41 : vector<8x8xf32>
    %43 = arith.truncf %42 : vector<8x8xf32> to vector<8x8xbf16>
    %cst_13 = arith.constant dense<0.000000e+00> : vector<8x32xf32>
    %44 = tpu.matmul %43, %27, %cst_13 {dimension_numbers = #tpu.dot_dimension_numbers<[1], [0], [0], [1], [0, 0, 1, 1], [], []>} : vector<8x8xbf16>, vector<8x32xbf16>, vector<8x32xf32> -> vector<8x32xf32>
    %45 = vector.extract_strided_slice %2 {offsets = [0, 64], sizes = [8, 32], strides = [1, 1]} : vector<8x384xbf16> to vector<8x32xbf16>
    %46 = vector.extract_strided_slice %2 {offsets = [0, 192], sizes = [8, 32], strides = [1, 1]} : vector<8x384xbf16> to vector<8x32xbf16>
    %47 = vector.extract_strided_slice %2 {offsets = [0, 320], sizes = [8, 32], strides = [1, 1]} : vector<8x384xbf16> to vector<8x32xbf16>
    %cst_14 = arith.constant dense<0.000000e+00> : vector<8x8xf32>
    %48 = tpu.matmul %45, %46, %cst_14 {dimension_numbers = #tpu.dot_dimension_numbers<[1], [1], [0], [0], [0, 0, 1, 0], [], []>} : vector<8x32xbf16>, vector<8x32xbf16>, vector<8x8xf32> -> vector<8x8xf32>
    %cst_15 = arith.constant 0.176776692 : f32
    %49 = vector.broadcast %cst_15 : f32 to vector<8x8xf32>
    %50 = arith.mulf %48, %49 : vector<8x8xf32>
    %51 = vector.broadcast %4 : vector<1x8xf32> to vector<8x8xf32>
    %52 = arith.addf %50, %51 : vector<8x8xf32>
    %cst_16 = arith.constant dense<0xFF800000> : vector<8xf32>
    %53 = vector.multi_reduction <maximumf>, %52, %cst_16 [1] : vector<8x8xf32> to vector<8xf32>
    %54 = vector.shape_cast %53 : vector<8xf32> to vector<8x1xf32>
    %55 = vector.broadcast %54 : vector<8x1xf32> to vector<8x8xf32>
    %56 = arith.subf %52, %55 : vector<8x8xf32>
    %57 = math.exp %56 : vector<8x8xf32>
    %cst_17 = arith.constant dense<0.000000e+00> : vector<8xf32>
    %58 = vector.multi_reduction <add>, %57, %cst_17 [1] : vector<8x8xf32> to vector<8xf32>
    %59 = vector.shape_cast %58 : vector<8xf32> to vector<8x1xf32>
    %60 = tpu.reciprocal %59 {approx = true} : vector<8x1xf32> -> vector<8x1xf32>
    %61 = vector.broadcast %60 : vector<8x1xf32> to vector<8x8xf32>
    %62 = arith.mulf %57, %61 : vector<8x8xf32>
    %63 = arith.truncf %62 : vector<8x8xf32> to vector<8x8xbf16>
    %cst_18 = arith.constant dense<0.000000e+00> : vector<8x32xf32>
    %64 = tpu.matmul %63, %47, %cst_18 {dimension_numbers = #tpu.dot_dimension_numbers<[1], [0], [0], [1], [0, 0, 1, 1], [], []>} : vector<8x8xbf16>, vector<8x32xbf16>, vector<8x32xf32> -> vector<8x32xf32>
    %65 = vector.extract_strided_slice %2 {offsets = [0, 96], sizes = [8, 32], strides = [1, 1]} : vector<8x384xbf16> to vector<8x32xbf16>
    %66 = vector.extract_strided_slice %2 {offsets = [0, 224], sizes = [8, 32], strides = [1, 1]} : vector<8x384xbf16> to vector<8x32xbf16>
    %67 = vector.extract_strided_slice %2 {offsets = [0, 352], sizes = [8, 32], strides = [1, 1]} : vector<8x384xbf16> to vector<8x32xbf16>
    %cst_19 = arith.constant dense<0.000000e+00> : vector<8x8xf32>
    %68 = tpu.matmul %65, %66, %cst_19 {dimension_numbers = #tpu.dot_dimension_numbers<[1], [1], [0], [0], [0, 0, 1, 0], [], []>} : vector<8x32xbf16>, vector<8x32xbf16>, vector<8x8xf32> -> vector<8x8xf32>
    %cst_20 = arith.constant 0.176776692 : f32
    %69 = vector.broadcast %cst_20 : f32 to vector<8x8xf32>
    %70 = arith.mulf %68, %69 : vector<8x8xf32>
    %71 = vector.broadcast %4 : vector<1x8xf32> to vector<8x8xf32>
    %72 = arith.addf %70, %71 : vector<8x8xf32>
    %cst_21 = arith.constant dense<0xFF800000> : vector<8xf32>
    %73 = vector.multi_reduction <maximumf>, %72, %cst_21 [1] : vector<8x8xf32> to vector<8xf32>
    %74 = vector.shape_cast %73 : vector<8xf32> to vector<8x1xf32>
    %75 = vector.broadcast %74 : vector<8x1xf32> to vector<8x8xf32>
    %76 = arith.subf %72, %75 : vector<8x8xf32>
    %77 = math.exp %76 : vector<8x8xf32>
    %cst_22 = arith.constant dense<0.000000e+00> : vector<8xf32>
    %78 = vector.multi_reduction <add>, %77, %cst_22 [1] : vector<8x8xf32> to vector<8xf32>
    %79 = vector.shape_cast %78 : vector<8xf32> to vector<8x1xf32>
    %80 = tpu.reciprocal %79 {approx = true} : vector<8x1xf32> -> vector<8x1xf32>
    %81 = vector.broadcast %80 : vector<8x1xf32> to vector<8x8xf32>
    %82 = arith.mulf %77, %81 : vector<8x8xf32>
    %83 = arith.truncf %82 : vector<8x8xf32> to vector<8x8xbf16>
    %cst_23 = arith.constant dense<0.000000e+00> : vector<8x32xf32>
    %84 = tpu.matmul %83, %67, %cst_23 {dimension_numbers = #tpu.dot_dimension_numbers<[1], [0], [0], [1], [0, 0, 1, 1], [], []>} : vector<8x8xbf16>, vector<8x32xbf16>, vector<8x32xf32> -> vector<8x32xf32>
    %85 = tpu.concatenate %24, %44, %64, %84 in 1 : vector<8x32xf32>, vector<8x32xf32>, vector<8x32xf32>, vector<8x32xf32> -> vector<8x128xf32>
    %c0_24 = arith.constant 0 : index
    %c0_25 = arith.constant 0 : index
    %c0_26 = arith.constant 0 : index
    %86 = vector.load %arg3[%c0_24, %c0_25, %c0_26] : memref<1x8x128xf32, #tpu.memory_space<vmem>>, vector<1x8x128xf32>
    %87 = vector.shape_cast %86 : vector<1x8x128xf32> to vector<8x128xf32>
    %88 = vector.shape_cast %85 : vector<8x128xf32> to vector<1x8x128xf32>
    tpu.vector_store %arg3[%c0_24, %c0_25, %c0_26], %88 {strides = array<i32>} : memref<1x8x128xf32, #tpu.memory_space<vmem>>, vector<1x8x128xf32>,
    return
  }
  func.func @transform_0(%arg0: i32) -> (i32, i32, i32) {
    %c0_i32 = arith.constant 0 : i32
    %c0_i32_0 = arith.constant 0 : i32
    %c0_i32_1 = arith.constant 0 : i32
    return %arg0, %c0_i32, %c0_i32_0 : i32, i32, i32
  }
  func.func @transform_1(%arg0: i32) -> (i32, i32, i32) {
    %c0_i32 = arith.constant 0 : i32
    %c0_i32_0 = arith.constant 0 : i32
    %c0_i32_1 = arith.constant 0 : i32
    return %arg0, %c0_i32, %c0_i32_0 : i32, i32, i32
  }
  func.func @transform_2(%arg0: i32) -> (i32, i32, i32) {
    %c0_i32 = arith.constant 0 : i32
    %c0_i32_0 = arith.constant 0 : i32
    %c0_i32_1 = arith.constant 0 : i32
    return %arg0, %c0_i32, %c0_i32_0 : i32, i32, i32
  }
}

module attributes {stable_mosaic.version = 11 : i64} {
  func.func @_matmul_bias_kernel(%arg0: i32, %arg1: i32, %arg2: memref<16x128xf32, #tpu.memory_space<vmem>>, %arg3: memref<128x128xbf16, #tpu.memory_space<vmem>>, %arg4: memref<1x128xf32, #tpu.memory_space<vmem>>, %arg5: memref<16x128xf32, #tpu.memory_space<vmem>>) attributes {dimension_semantics = [#tpu.dimension_semantics<parallel>, #tpu.dimension_semantics<parallel>], iteration_bounds = array<i64: 1, 3>, scalar_prefetch = 0 : i64, scratch_operands = 0 : i64, tpu.core_type = #tpu.core_type<tc>, window_params = [{transform_indices = @transform_0, window_bounds = array<i64: 16, 128>}, {transform_indices = @transform_1, window_bounds = array<i64: 128, 128>}, {transform_indices = @transform_2, window_bounds = array<i64: 1, 128>}, {transform_indices = @transform_3, window_bounds = array<i64: 16, 128>}]} {
    %c0 = arith.constant 0 : index
    %c0_0 = arith.constant 0 : index
    %0 = vector.load %arg2[%c0, %c0_0] : memref<16x128xf32, #tpu.memory_space<vmem>>, vector<16x128xf32>
    %1 = arith.truncf %0 : vector<16x128xf32> to vector<16x128xbf16>
    %c0_1 = arith.constant 0 : index
    %c0_2 = arith.constant 0 : index
    %2 = vector.load %arg3[%c0_1, %c0_2] : memref<128x128xbf16, #tpu.memory_space<vmem>>, vector<128x128xbf16>
    %cst = arith.constant dense<0.000000e+00> : vector<16x128xf32>
    %3 = tpu.matmul %1, %2, %cst {dimension_numbers = #tpu.dot_dimension_numbers<[1], [0], [0], [1], [0, 0, 1, 1], [], []>} : vector<16x128xbf16>, vector<128x128xbf16>, vector<16x128xf32> -> vector<16x128xf32>
    %c0_3 = arith.constant 0 : index
    %c0_4 = arith.constant 0 : index
    %4 = vector.load %arg4[%c0_3, %c0_4] : memref<1x128xf32, #tpu.memory_space<vmem>>, vector<1x128xf32>
    %5 = vector.broadcast %4 : vector<1x128xf32> to vector<16x128xf32>
    %6 = arith.addf %3, %5 : vector<16x128xf32>
    %c0_5 = arith.constant 0 : index
    %c0_6 = arith.constant 0 : index
    %7 = vector.load %arg5[%c0_5, %c0_6] : memref<16x128xf32, #tpu.memory_space<vmem>>, vector<16x128xf32>
    tpu.vector_store %arg5[%c0_5, %c0_6], %6 {strides = array<i32>} : memref<16x128xf32, #tpu.memory_space<vmem>>, vector<16x128xf32>,
    return
  }
  func.func @transform_0(%arg0: i32, %arg1: i32) -> (i32, i32) {
    %c0_i32 = arith.constant 0 : i32
    %c0_i32_0 = arith.constant 0 : i32
    return %arg0, %c0_i32 : i32, i32
  }
  func.func @transform_1(%arg0: i32, %arg1: i32) -> (i32, i32) {
    %c0_i32 = arith.constant 0 : i32
    %c0_i32_0 = arith.constant 0 : i32
    return %c0_i32, %arg1 : i32, i32
  }
  func.func @transform_2(%arg0: i32, %arg1: i32) -> (i32, i32) {
    %c0_i32 = arith.constant 0 : i32
    %c0_i32_0 = arith.constant 0 : i32
    return %c0_i32, %arg1 : i32, i32
  }
  func.func @transform_3(%arg0: i32, %arg1: i32) -> (i32, i32) {
    %c0_i32 = arith.constant 0 : i32
    return %arg0, %arg1 : i32, i32
  }
}

module attributes {stable_mosaic.version = 11 : i64} {
  func.func @_ln_kernel(%arg0: i32, %arg1: memref<16x128xf32, #tpu.memory_space<vmem>>, %arg2: memref<1x128xf32, #tpu.memory_space<vmem>>, %arg3: memref<1x128xf32, #tpu.memory_space<vmem>>, %arg4: memref<16x128xf32, #tpu.memory_space<vmem>>) attributes {dimension_semantics = [#tpu.dimension_semantics<parallel>], iteration_bounds = array<i64: 1>, scalar_prefetch = 0 : i64, scratch_operands = 0 : i64, tpu.core_type = #tpu.core_type<tc>, window_params = [{transform_indices = @transform_0, window_bounds = array<i64: 16, 128>}, {pipeline_mode = #tpu.pipeline_mode<synchronous>, transform_indices = @transform_1, window_bounds = array<i64: 1, 128>}, {pipeline_mode = #tpu.pipeline_mode<synchronous>, transform_indices = @transform_2, window_bounds = array<i64: 1, 128>}, {transform_indices = @transform_3, window_bounds = array<i64: 16, 128>}]} {
    %c0 = arith.constant 0 : index
    %c0_0 = arith.constant 0 : index
    %0 = vector.load %arg1[%c0, %c0_0] : memref<16x128xf32, #tpu.memory_space<vmem>>, vector<16x128xf32>
    %c0_1 = arith.constant 0 : index
    %c0_2 = arith.constant 0 : index
    %1 = vector.load %arg2[%c0_1, %c0_2] : memref<1x128xf32, #tpu.memory_space<vmem>>, vector<1x128xf32>
    %c0_3 = arith.constant 0 : index
    %c0_4 = arith.constant 0 : index
    %2 = vector.load %arg3[%c0_3, %c0_4] : memref<1x128xf32, #tpu.memory_space<vmem>>, vector<1x128xf32>
    %cst = arith.constant dense<0.000000e+00> : vector<16xf32>
    %3 = vector.multi_reduction <add>, %0, %cst [1] : vector<16x128xf32> to vector<16xf32>
    %4 = vector.shape_cast %3 : vector<16xf32> to vector<16x1xf32>
    %cst_5 = arith.constant 1.280000e+02 : f32
    %5 = vector.broadcast %cst_5 : f32 to vector<16x1xf32>
    %6 = arith.divf %4, %5 : vector<16x1xf32>
    %7 = vector.broadcast %6 : vector<16x1xf32> to vector<16x128xf32>
    %8 = arith.subf %0, %7 : vector<16x128xf32>
    %9 = arith.mulf %8, %8 : vector<16x128xf32>
    %cst_6 = arith.constant dense<0.000000e+00> : vector<16xf32>
    %10 = vector.multi_reduction <add>, %9, %cst_6 [1] : vector<16x128xf32> to vector<16xf32>
    %11 = vector.shape_cast %10 : vector<16xf32> to vector<16x1xf32>
    %cst_7 = arith.constant 1.280000e+02 : f32
    %12 = vector.broadcast %cst_7 : f32 to vector<16x1xf32>
    %13 = arith.divf %11, %12 : vector<16x1xf32>
    %cst_8 = arith.constant 9.99999996E-13 : f32
    %14 = vector.broadcast %cst_8 : f32 to vector<16x1xf32>
    %15 = arith.addf %13, %14 : vector<16x1xf32>
    %16 = math.rsqrt %15 : vector<16x1xf32>
    %17 = vector.broadcast %16 : vector<16x1xf32> to vector<16x128xf32>
    %18 = arith.mulf %8, %17 : vector<16x128xf32>
    %19 = vector.broadcast %1 : vector<1x128xf32> to vector<16x128xf32>
    %20 = arith.mulf %18, %19 : vector<16x128xf32>
    %21 = vector.broadcast %2 : vector<1x128xf32> to vector<16x128xf32>
    %22 = arith.addf %20, %21 : vector<16x128xf32>
    %c0_9 = arith.constant 0 : index
    %c0_10 = arith.constant 0 : index
    %23 = vector.load %arg4[%c0_9, %c0_10] : memref<16x128xf32, #tpu.memory_space<vmem>>, vector<16x128xf32>
    tpu.vector_store %arg4[%c0_9, %c0_10], %22 {strides = array<i32>} : memref<16x128xf32, #tpu.memory_space<vmem>>, vector<16x128xf32>,
    return
  }
  func.func @transform_0(%arg0: i32) -> (i32, i32) {
    %c0_i32 = arith.constant 0 : i32
    %c0_i32_0 = arith.constant 0 : i32
    return %arg0, %c0_i32 : i32, i32
  }
  func.func @transform_1(%arg0: i32) -> (i32, i32) {
    %c0_i32 = arith.constant 0 : i32
    %c0_i32_0 = arith.constant 0 : i32
    %c0_i32_1 = arith.constant 0 : i32
    return %c0_i32, %c0_i32_0 : i32, i32
  }
  func.func @transform_2(%arg0: i32) -> (i32, i32) {
    %c0_i32 = arith.constant 0 : i32
    %c0_i32_0 = arith.constant 0 : i32
    %c0_i32_1 = arith.constant 0 : i32
    return %c0_i32, %c0_i32_0 : i32, i32
  }
  func.func @transform_3(%arg0: i32) -> (i32, i32) {
    %c0_i32 = arith.constant 0 : i32
    %c0_i32_0 = arith.constant 0 : i32
    return %arg0, %c0_i32 : i32, i32
  }
}

module attributes {stable_mosaic.version = 11 : i64} {
  func.func @_matmul_residual_ln_kernel(%arg0: i32, %arg1: memref<16x128xf32, #tpu.memory_space<vmem>>, %arg2: memref<128x128xbf16, #tpu.memory_space<vmem>>, %arg3: memref<1x128xf32, #tpu.memory_space<vmem>>, %arg4: memref<16x128xf32, #tpu.memory_space<vmem>>, %arg5: memref<1x128xf32, #tpu.memory_space<vmem>>, %arg6: memref<1x128xf32, #tpu.memory_space<vmem>>, %arg7: memref<16x128xf32, #tpu.memory_space<vmem>>) attributes {dimension_semantics = [#tpu.dimension_semantics<parallel>], iteration_bounds = array<i64: 1>, scalar_prefetch = 0 : i64, scratch_operands = 0 : i64, tpu.core_type = #tpu.core_type<tc>, window_params = [{transform_indices = @transform_0, window_bounds = array<i64: 16, 128>}, {pipeline_mode = #tpu.pipeline_mode<synchronous>, transform_indices = @transform_1, window_bounds = array<i64: 128, 128>}, {pipeline_mode = #tpu.pipeline_mode<synchronous>, transform_indices = @transform_2, window_bounds = array<i64: 1, 128>}, {transform_indices = @transform_3, window_bounds = array<i64: 16, 128>}, {pipeline_mode = #tpu.pipeline_mode<synchronous>, transform_indices = @transform_4, window_bounds = array<i64: 1, 128>}, {pipeline_mode = #tpu.pipeline_mode<synchronous>, transform_indices = @transform_5, window_bounds = array<i64: 1, 128>}, {transform_indices = @transform_6, window_bounds = array<i64: 16, 128>}]} {
    %c0 = arith.constant 0 : index
    %c0_0 = arith.constant 0 : index
    %0 = vector.load %arg1[%c0, %c0_0] : memref<16x128xf32, #tpu.memory_space<vmem>>, vector<16x128xf32>
    %1 = arith.truncf %0 : vector<16x128xf32> to vector<16x128xbf16>
    %c0_1 = arith.constant 0 : index
    %c0_2 = arith.constant 0 : index
    %2 = vector.load %arg2[%c0_1, %c0_2] : memref<128x128xbf16, #tpu.memory_space<vmem>>, vector<128x128xbf16>
    %cst = arith.constant dense<0.000000e+00> : vector<16x128xf32>
    %3 = tpu.matmul %1, %2, %cst {dimension_numbers = #tpu.dot_dimension_numbers<[1], [0], [0], [1], [0, 0, 1, 1], [], []>} : vector<16x128xbf16>, vector<128x128xbf16>, vector<16x128xf32> -> vector<16x128xf32>
    %c0_3 = arith.constant 0 : index
    %c0_4 = arith.constant 0 : index
    %4 = vector.load %arg3[%c0_3, %c0_4] : memref<1x128xf32, #tpu.memory_space<vmem>>, vector<1x128xf32>
    %5 = vector.broadcast %4 : vector<1x128xf32> to vector<16x128xf32>
    %6 = arith.addf %3, %5 : vector<16x128xf32>
    %c0_5 = arith.constant 0 : index
    %c0_6 = arith.constant 0 : index
    %7 = vector.load %arg4[%c0_5, %c0_6] : memref<16x128xf32, #tpu.memory_space<vmem>>, vector<16x128xf32>
    %8 = arith.addf %6, %7 : vector<16x128xf32>
    %c0_7 = arith.constant 0 : index
    %c0_8 = arith.constant 0 : index
    %9 = vector.load %arg5[%c0_7, %c0_8] : memref<1x128xf32, #tpu.memory_space<vmem>>, vector<1x128xf32>
    %c0_9 = arith.constant 0 : index
    %c0_10 = arith.constant 0 : index
    %10 = vector.load %arg6[%c0_9, %c0_10] : memref<1x128xf32, #tpu.memory_space<vmem>>, vector<1x128xf32>
    %cst_11 = arith.constant dense<0.000000e+00> : vector<16xf32>
    %11 = vector.multi_reduction <add>, %8, %cst_11 [1] : vector<16x128xf32> to vector<16xf32>
    %12 = vector.shape_cast %11 : vector<16xf32> to vector<16x1xf32>
    %cst_12 = arith.constant 1.280000e+02 : f32
    %13 = vector.broadcast %cst_12 : f32 to vector<16x1xf32>
    %14 = arith.divf %12, %13 : vector<16x1xf32>
    %15 = vector.broadcast %14 : vector<16x1xf32> to vector<16x128xf32>
    %16 = arith.subf %8, %15 : vector<16x128xf32>
    %17 = arith.mulf %16, %16 : vector<16x128xf32>
    %cst_13 = arith.constant dense<0.000000e+00> : vector<16xf32>
    %18 = vector.multi_reduction <add>, %17, %cst_13 [1] : vector<16x128xf32> to vector<16xf32>
    %19 = vector.shape_cast %18 : vector<16xf32> to vector<16x1xf32>
    %cst_14 = arith.constant 1.280000e+02 : f32
    %20 = vector.broadcast %cst_14 : f32 to vector<16x1xf32>
    %21 = arith.divf %19, %20 : vector<16x1xf32>
    %cst_15 = arith.constant 9.99999996E-13 : f32
    %22 = vector.broadcast %cst_15 : f32 to vector<16x1xf32>
    %23 = arith.addf %21, %22 : vector<16x1xf32>
    %24 = math.rsqrt %23 : vector<16x1xf32>
    %25 = vector.broadcast %24 : vector<16x1xf32> to vector<16x128xf32>
    %26 = arith.mulf %16, %25 : vector<16x128xf32>
    %27 = vector.broadcast %9 : vector<1x128xf32> to vector<16x128xf32>
    %28 = arith.mulf %26, %27 : vector<16x128xf32>
    %29 = vector.broadcast %10 : vector<1x128xf32> to vector<16x128xf32>
    %30 = arith.addf %28, %29 : vector<16x128xf32>
    %c0_16 = arith.constant 0 : index
    %c0_17 = arith.constant 0 : index
    %31 = vector.load %arg7[%c0_16, %c0_17] : memref<16x128xf32, #tpu.memory_space<vmem>>, vector<16x128xf32>
    tpu.vector_store %arg7[%c0_16, %c0_17], %30 {strides = array<i32>} : memref<16x128xf32, #tpu.memory_space<vmem>>, vector<16x128xf32>,
    return
  }
  func.func @transform_0(%arg0: i32) -> (i32, i32) {
    %c0_i32 = arith.constant 0 : i32
    %c0_i32_0 = arith.constant 0 : i32
    return %arg0, %c0_i32 : i32, i32
  }
  func.func @transform_1(%arg0: i32) -> (i32, i32) {
    %c0_i32 = arith.constant 0 : i32
    %c0_i32_0 = arith.constant 0 : i32
    %c0_i32_1 = arith.constant 0 : i32
    return %c0_i32, %c0_i32_0 : i32, i32
  }
  func.func @transform_2(%arg0: i32) -> (i32, i32) {
    %c0_i32 = arith.constant 0 : i32
    %c0_i32_0 = arith.constant 0 : i32
    %c0_i32_1 = arith.constant 0 : i32
    return %c0_i32, %c0_i32_0 : i32, i32
  }
  func.func @transform_3(%arg0: i32) -> (i32, i32) {
    %c0_i32 = arith.constant 0 : i32
    %c0_i32_0 = arith.constant 0 : i32
    return %arg0, %c0_i32 : i32, i32
  }
  func.func @transform_4(%arg0: i32) -> (i32, i32) {
    %c0_i32 = arith.constant 0 : i32
    %c0_i32_0 = arith.constant 0 : i32
    %c0_i32_1 = arith.constant 0 : i32
    return %c0_i32, %c0_i32_0 : i32, i32
  }
  func.func @transform_5(%arg0: i32) -> (i32, i32) {
    %c0_i32 = arith.constant 0 : i32
    %c0_i32_0 = arith.constant 0 : i32
    %c0_i32_1 = arith.constant 0 : i32
    return %c0_i32, %c0_i32_0 : i32, i32
  }
  func.func @transform_6(%arg0: i32) -> (i32, i32) {
    %c0_i32 = arith.constant 0 : i32
    %c0_i32_0 = arith.constant 0 : i32
    return %arg0, %c0_i32 : i32, i32
  }
}

module attributes {stable_mosaic.version = 11 : i64} {
  func.func @_ffn_residual_ln_kernel(%arg0: i32, %arg1: memref<16x128xf32, #tpu.memory_space<vmem>>, %arg2: memref<128x256xbf16, #tpu.memory_space<vmem>>, %arg3: memref<1x256xf32, #tpu.memory_space<vmem>>, %arg4: memref<256x128xbf16, #tpu.memory_space<vmem>>, %arg5: memref<1x128xf32, #tpu.memory_space<vmem>>, %arg6: memref<16x128xf32, #tpu.memory_space<vmem>>, %arg7: memref<1x128xf32, #tpu.memory_space<vmem>>, %arg8: memref<1x128xf32, #tpu.memory_space<vmem>>, %arg9: memref<16x128xf32, #tpu.memory_space<vmem>>) attributes {dimension_semantics = [#tpu.dimension_semantics<parallel>], iteration_bounds = array<i64: 1>, scalar_prefetch = 0 : i64, scratch_operands = 0 : i64, tpu.core_type = #tpu.core_type<tc>, window_params = [{transform_indices = @transform_0, window_bounds = array<i64: 16, 128>}, {pipeline_mode = #tpu.pipeline_mode<synchronous>, transform_indices = @transform_1, window_bounds = array<i64: 128, 256>}, {pipeline_mode = #tpu.pipeline_mode<synchronous>, transform_indices = @transform_2, window_bounds = array<i64: 1, 256>}, {pipeline_mode = #tpu.pipeline_mode<synchronous>, transform_indices = @transform_3, window_bounds = array<i64: 256, 128>}, {pipeline_mode = #tpu.pipeline_mode<synchronous>, transform_indices = @transform_4, window_bounds = array<i64: 1, 128>}, {transform_indices = @transform_5, window_bounds = array<i64: 16, 128>}, {pipeline_mode = #tpu.pipeline_mode<synchronous>, transform_indices = @transform_6, window_bounds = array<i64: 1, 128>}, {pipeline_mode = #tpu.pipeline_mode<synchronous>, transform_indices = @transform_7, window_bounds = array<i64: 1, 128>}, {transform_indices = @transform_8, window_bounds = array<i64: 16, 128>}]} {
    %c0 = arith.constant 0 : index
    %c0_0 = arith.constant 0 : index
    %0 = vector.load %arg1[%c0, %c0_0] : memref<16x128xf32, #tpu.memory_space<vmem>>, vector<16x128xf32>
    %1 = arith.truncf %0 : vector<16x128xf32> to vector<16x128xbf16>
    %c0_1 = arith.constant 0 : index
    %c0_2 = arith.constant 0 : index
    %2 = vector.load %arg2[%c0_1, %c0_2] : memref<128x256xbf16, #tpu.memory_space<vmem>>, vector<128x256xbf16>
    %cst = arith.constant dense<0.000000e+00> : vector<16x256xf32>
    %3 = tpu.matmul %1, %2, %cst {dimension_numbers = #tpu.dot_dimension_numbers<[1], [0], [0], [1], [0, 0, 1, 1], [], []>} : vector<16x128xbf16>, vector<128x256xbf16>, vector<16x256xf32> -> vector<16x256xf32>
    %c0_3 = arith.constant 0 : index
    %c0_4 = arith.constant 0 : index
    %4 = vector.load %arg3[%c0_3, %c0_4] : memref<1x256xf32, #tpu.memory_space<vmem>>, vector<1x256xf32>
    %5 = vector.broadcast %4 : vector<1x256xf32> to vector<16x256xf32>
    %6 = arith.addf %3, %5 : vector<16x256xf32>
    %cst_5 = arith.constant 5.000000e-01 : f32
    %7 = vector.broadcast %cst_5 : f32 to vector<16x256xf32>
    %8 = arith.mulf %7, %6 : vector<16x256xf32>
    %cst_6 = arith.constant 4.471500e-02 : f32
    %9 = vector.broadcast %cst_6 : f32 to vector<16x256xf32>
    %10 = arith.mulf %9, %6 : vector<16x256xf32>
    %11 = arith.mulf %10, %6 : vector<16x256xf32>
    %12 = arith.mulf %11, %6 : vector<16x256xf32>
    %13 = arith.addf %6, %12 : vector<16x256xf32>
    %cst_7 = arith.constant 0.797884583 : f32
    %14 = vector.broadcast %cst_7 : f32 to vector<16x256xf32>
    %15 = arith.mulf %14, %13 : vector<16x256xf32>
    %16 = math.tanh %15 : vector<16x256xf32>
    %cst_8 = arith.constant 1.000000e+00 : f32
    %17 = vector.broadcast %cst_8 : f32 to vector<16x256xf32>
    %18 = arith.addf %17, %16 : vector<16x256xf32>
    %19 = arith.mulf %8, %18 : vector<16x256xf32>
    %20 = arith.truncf %19 : vector<16x256xf32> to vector<16x256xbf16>
    %c0_9 = arith.constant 0 : index
    %c0_10 = arith.constant 0 : index
    %21 = vector.load %arg4[%c0_9, %c0_10] : memref<256x128xbf16, #tpu.memory_space<vmem>>, vector<256x128xbf16>
    %cst_11 = arith.constant dense<0.000000e+00> : vector<16x128xf32>
    %22 = tpu.matmul %20, %21, %cst_11 {dimension_numbers = #tpu.dot_dimension_numbers<[1], [0], [0], [1], [0, 0, 1, 1], [], []>} : vector<16x256xbf16>, vector<256x128xbf16>, vector<16x128xf32> -> vector<16x128xf32>
    %c0_12 = arith.constant 0 : index
    %c0_13 = arith.constant 0 : index
    %23 = vector.load %arg5[%c0_12, %c0_13] : memref<1x128xf32, #tpu.memory_space<vmem>>, vector<1x128xf32>
    %24 = vector.broadcast %23 : vector<1x128xf32> to vector<16x128xf32>
    %25 = arith.addf %22, %24 : vector<16x128xf32>
    %c0_14 = arith.constant 0 : index
    %c0_15 = arith.constant 0 : index
    %26 = vector.load %arg6[%c0_14, %c0_15] : memref<16x128xf32, #tpu.memory_space<vmem>>, vector<16x128xf32>
    %27 = arith.addf %25, %26 : vector<16x128xf32>
    %c0_16 = arith.constant 0 : index
    %c0_17 = arith.constant 0 : index
    %28 = vector.load %arg7[%c0_16, %c0_17] : memref<1x128xf32, #tpu.memory_space<vmem>>, vector<1x128xf32>
    %c0_18 = arith.constant 0 : index
    %c0_19 = arith.constant 0 : index
    %29 = vector.load %arg8[%c0_18, %c0_19] : memref<1x128xf32, #tpu.memory_space<vmem>>, vector<1x128xf32>
    %cst_20 = arith.constant dense<0.000000e+00> : vector<16xf32>
    %30 = vector.multi_reduction <add>, %27, %cst_20 [1] : vector<16x128xf32> to vector<16xf32>
    %31 = vector.shape_cast %30 : vector<16xf32> to vector<16x1xf32>
    %cst_21 = arith.constant 1.280000e+02 : f32
    %32 = vector.broadcast %cst_21 : f32 to vector<16x1xf32>
    %33 = arith.divf %31, %32 : vector<16x1xf32>
    %34 = vector.broadcast %33 : vector<16x1xf32> to vector<16x128xf32>
    %35 = arith.subf %27, %34 : vector<16x128xf32>
    %36 = arith.mulf %35, %35 : vector<16x128xf32>
    %cst_22 = arith.constant dense<0.000000e+00> : vector<16xf32>
    %37 = vector.multi_reduction <add>, %36, %cst_22 [1] : vector<16x128xf32> to vector<16xf32>
    %38 = vector.shape_cast %37 : vector<16xf32> to vector<16x1xf32>
    %cst_23 = arith.constant 1.280000e+02 : f32
    %39 = vector.broadcast %cst_23 : f32 to vector<16x1xf32>
    %40 = arith.divf %38, %39 : vector<16x1xf32>
    %cst_24 = arith.constant 9.99999996E-13 : f32
    %41 = vector.broadcast %cst_24 : f32 to vector<16x1xf32>
    %42 = arith.addf %40, %41 : vector<16x1xf32>
    %43 = math.rsqrt %42 : vector<16x1xf32>
    %44 = vector.broadcast %43 : vector<16x1xf32> to vector<16x128xf32>
    %45 = arith.mulf %35, %44 : vector<16x128xf32>
    %46 = vector.broadcast %28 : vector<1x128xf32> to vector<16x128xf32>
    %47 = arith.mulf %45, %46 : vector<16x128xf32>
    %48 = vector.broadcast %29 : vector<1x128xf32> to vector<16x128xf32>
    %49 = arith.addf %47, %48 : vector<16x128xf32>
    %c0_25 = arith.constant 0 : index
    %c0_26 = arith.constant 0 : index
    %50 = vector.load %arg9[%c0_25, %c0_26] : memref<16x128xf32, #tpu.memory_space<vmem>>, vector<16x128xf32>
    tpu.vector_store %arg9[%c0_25, %c0_26], %49 {strides = array<i32>} : memref<16x128xf32, #tpu.memory_space<vmem>>, vector<16x128xf32>,
    return
  }
  func.func @transform_0(%arg0: i32) -> (i32, i32) {
    %c0_i32 = arith.constant 0 : i32
    %c0_i32_0 = arith.constant 0 : i32
    return %arg0, %c0_i32 : i32, i32
  }
  func.func @transform_1(%arg0: i32) -> (i32, i32) {
    %c0_i32 = arith.constant 0 : i32
    %c0_i32_0 = arith.constant 0 : i32
    %c0_i32_1 = arith.constant 0 : i32
    return %c0_i32, %c0_i32_0 : i32, i32
  }
  func.func @transform_2(%arg0: i32) -> (i32, i32) {
    %c0_i32 = arith.constant 0 : i32
    %c0_i32_0 = arith.constant 0 : i32
    %c0_i32_1 = arith.constant 0 : i32
    return %c0_i32, %c0_i32_0 : i32, i32
  }
  func.func @transform_3(%arg0: i32) -> (i32, i32) {
    %c0_i32 = arith.constant 0 : i32
    %c0_i32_0 = arith.constant 0 : i32
    %c0_i32_1 = arith.constant 0 : i32
    return %c0_i32, %c0_i32_0 : i32, i32
  }
  func.func @transform_4(%arg0: i32) -> (i32, i32) {
    %c0_i32 = arith.constant 0 : i32
    %c0_i32_0 = arith.constant 0 : i32
    %c0_i32_1 = arith.constant 0 : i32
    return %c0_i32, %c0_i32_0 : i32, i32
  }
  func.func @transform_5(%arg0: i32) -> (i32, i32) {
    %c0_i32 = arith.constant 0 : i32
    %c0_i32_0 = arith.constant 0 : i32
    return %arg0, %c0_i32 : i32, i32
  }
  func.func @transform_6(%arg0: i32) -> (i32, i32) {
    %c0_i32 = arith.constant 0 : i32
    %c0_i32_0 = arith.constant 0 : i32
    %c0_i32_1 = arith.constant 0 : i32
    return %c0_i32, %c0_i32_0 : i32, i32
  }
  func.func @transform_7(%arg0: i32) -> (i32, i32) {
    %c0_i32 = arith.constant 0 : i32
    %c0_i32_0 = arith.constant 0 : i32
    %c0_i32_1 = arith.constant 0 : i32
    return %c0_i32, %c0_i32_0 : i32, i32
  }
  func.func @transform_8(%arg0: i32) -> (i32, i32) {
    %c0_i32 = arith.constant 0 : i32
    %c0_i32_0 = arith.constant 0 : i32
    return %arg0, %c0_i32 : i32, i32
  }
}

module attributes {stable_mosaic.version = 11 : i64} {
  func.func @_head_kernel(%arg0: memref<2x128xf32, #tpu.memory_space<vmem>>, %arg1: memref<128x128xbf16, #tpu.memory_space<vmem>>, %arg2: memref<1x128xf32, #tpu.memory_space<vmem>>, %arg3: memref<128x128xbf16, #tpu.memory_space<vmem>>, %arg4: memref<1x128xf32, #tpu.memory_space<vmem>>, %arg5: memref<2x128xf32, #tpu.memory_space<vmem>>) attributes {dimension_semantics = [], scalar_prefetch = 0 : i64, scratch_operands = 0 : i64, tpu.core_type = #tpu.core_type<tc>} {
    %c0 = arith.constant 0 : index
    %c0_0 = arith.constant 0 : index
    %0 = vector.load %arg0[%c0, %c0_0] : memref<2x128xf32, #tpu.memory_space<vmem>>, vector<2x128xf32>
    %1 = arith.truncf %0 : vector<2x128xf32> to vector<2x128xbf16>
    %c0_1 = arith.constant 0 : index
    %c0_2 = arith.constant 0 : index
    %2 = vector.load %arg1[%c0_1, %c0_2] : memref<128x128xbf16, #tpu.memory_space<vmem>>, vector<128x128xbf16>
    %cst = arith.constant dense<0.000000e+00> : vector<2x128xf32>
    %3 = tpu.matmul %1, %2, %cst {dimension_numbers = #tpu.dot_dimension_numbers<[1], [0], [0], [1], [0, 0, 1, 1], [], []>} : vector<2x128xbf16>, vector<128x128xbf16>, vector<2x128xf32> -> vector<2x128xf32>
    %c0_3 = arith.constant 0 : index
    %c0_4 = arith.constant 0 : index
    %4 = vector.load %arg2[%c0_3, %c0_4] : memref<1x128xf32, #tpu.memory_space<vmem>>, vector<1x128xf32>
    %5 = vector.broadcast %4 : vector<1x128xf32> to vector<2x128xf32>
    %6 = arith.addf %3, %5 : vector<2x128xf32>
    %7 = math.tanh %6 : vector<2x128xf32>
    %8 = arith.truncf %7 : vector<2x128xf32> to vector<2x128xbf16>
    %c0_5 = arith.constant 0 : index
    %c0_6 = arith.constant 0 : index
    %9 = vector.load %arg3[%c0_5, %c0_6] : memref<128x128xbf16, #tpu.memory_space<vmem>>, vector<128x128xbf16>
    %cst_7 = arith.constant dense<0.000000e+00> : vector<2x128xf32>
    %10 = tpu.matmul %8, %9, %cst_7 {dimension_numbers = #tpu.dot_dimension_numbers<[1], [0], [0], [1], [0, 0, 1, 1], [], []>} : vector<2x128xbf16>, vector<128x128xbf16>, vector<2x128xf32> -> vector<2x128xf32>
    %c0_8 = arith.constant 0 : index
    %c0_9 = arith.constant 0 : index
    %11 = vector.load %arg4[%c0_8, %c0_9] : memref<1x128xf32, #tpu.memory_space<vmem>>, vector<1x128xf32>
    %12 = vector.broadcast %11 : vector<1x128xf32> to vector<2x128xf32>
    %13 = arith.addf %10, %12 : vector<2x128xf32>
    %cst_10 = arith.constant 5.000000e-01 : f32
    %14 = vector.broadcast %cst_10 : f32 to vector<2x128xf32>
    %15 = arith.mulf %14, %13 : vector<2x128xf32>
    %16 = math.tanh %15 : vector<2x128xf32>
    %cst_11 = arith.constant 1.000000e+00 : f32
    %17 = vector.broadcast %cst_11 : f32 to vector<2x128xf32>
    %18 = arith.addf %16, %17 : vector<2x128xf32>
    %cst_12 = arith.constant 5.000000e-01 : f32
    %19 = vector.broadcast %cst_12 : f32 to vector<2x128xf32>
    %20 = arith.mulf %19, %18 : vector<2x128xf32>
    %c0_13 = arith.constant 0 : index
    %c0_14 = arith.constant 0 : index
    %21 = vector.load %arg5[%c0_13, %c0_14] : memref<2x128xf32, #tpu.memory_space<vmem>>, vector<2x128xf32>
    tpu.vector_store %arg5[%c0_13, %c0_14], %20 {strides = array<i32>} : memref<2x128xf32, #tpu.memory_space<vmem>>, vector<2x128xf32>,
    return
  }
}

</mosaic_0001>

<bundles_post_ra>
// kernel: bert_forward.10
= control target key start
LH: loop header
LB: loop body
LE: loop exit
PB: predicated region body
PF: predicated region fallthrough
CT: control target
= control target key end

     0   :  { %s107_s0 = inlined_call_operand.vmem [shape: f32[16,128], index: 0, kind: input, shape index: {}]   ;;  %s108_s1 = inlined_call_operand.vmem [shape: f32[1,128], index: 1, kind: input, shape index: {}]   ;;  %s109_s2 = inlined_call_operand.vmem [shape: f32[1,128], index: 2, kind: input, shape index: {}]   ;;  %s110_s3 = inlined_call_operand.vmem [shape: f32[16,128], index: 3, kind: output, shape index: {}]  }
   0x1   :  { %v14_v0 = vld [vmem:[%s107_s0] sm:$0xff]  ;;  %v15_v1 = vld [vmem:[%s107_s0 + $0x8] sm:$0xff] }
   0x2   :  { %18 = vadd.xlane.f32.xlu0 %v14_v0  ;;  %v63_v17 = vld [vmem:[%s108_s1] ss:$0 sm:$0xff] }
   0x3   :  { %v64_v19 = vld [vmem:[%s109_s2] ss:$0 sm:$0xff] }
   0x6   :  { %20 = vadd.xlane.f32.xlu0 %v15_v1 }
  0x8f   :  { %v19_v2 = vpop.xlane.xlu0 %18 }
  0x90   :  { %v23_v3 = vmul.f32 0.0078125, %v19_v2 }
  0x92   :  { %v25_v4 = vsub.f32 %v14_v0, %v23_v3 }
  0x93   :  { %v21_v5 = vpop.xlane.xlu0 %20 }
  0x94   :  { %v24_v6 = vmul.f32 0.0078125, %v21_v5  ;;  %v27_v7 = vmul.f32 %v25_v4, %v25_v4 }
  0x96   :  { %v26_v8 = vsub.f32 %v15_v1, %v24_v6  ;;  %29 = vadd.xlane.f32.xlu1 %v27_v7 }
  0x98   :  { %v28_v9 = vmul.f32 %v26_v8, %v26_v8 }
  0x9a   :  { %31 = vadd.xlane.f32.xlu1 %v28_v9 }
 0x123   :  { %v30_v10 = vpop.xlane.xlu1 %29 }
 0x124   :  { %v33_v11 = vmul.f32 0.0078125, %v30_v10 }
 0x126   :  { %v35_v12 = vadd.f32 1e-12, %v33_v11 }
 0x127   :  { %v32_v13 = vpop.xlane.xlu1 %31 }
 0x128   :  { %65 = vrsqrt.f32 %v35_v12  ;;  %v34_v14 = vmul.f32 0.0078125, %v32_v13 }
 0x12a   :  { %v36_v15 = vadd.f32 1e-12, %v34_v14 }
 0x12c   :  { %67 = vrsqrt.f32 %v36_v15 }
 0x132   :  { %v66_v16 = vpop.eup %65 }
 0x133   :  { %v39_v18 = vmul.f32 %v66_v16, %v25_v4 }
 0x135   :  { %v47_v20 = vmul.f32 %v63_v17, %v39_v18 }
 0x136   :  { %v68_v21 = vpop.eup %67 }
 0x137   :  { %v55_v22 = vadd.f32 %v64_v19, %v47_v20  ;;  %v40_v23 = vmul.f32 %v68_v21, %v26_v8 }
 0x139   :  { %57 = vst [vmem:[%s110_s3] sm:$0xff] %v55_v22  ;;  %v48_v24 = vmul.f32 %v63_v17, %v40_v23 }
 0x13b   :  { %v56_v25 = vadd.f32 %v64_v19, %v48_v24 }
 0x13d   :  { %58 = vst [vmem:[%s110_s3 + $0x8] sm:$0xff] %v56_v25 }

// kernel: bert_forward.11
= control target key start
LH: loop header
LB: loop body
LE: loop exit
PB: predicated region body
PF: predicated region fallthrough
CT: control target
= control target key end

     0   :  { %s738_s12 = smov 0   ;;  %s740_s13 = smov 0   ;;  %s843_s0 = inlined_call_operand.vmem [shape: f32[16,128], index: 0, kind: input, shape index: {}]   ;;  %s844_s1 = inlined_call_operand.vmem [shape: bf16[128,384], index: 1, kind: input, shape index: {}]   ;;  %s845_s2 = inlined_call_operand.vmem [shape: f32[1,384], index: 2, kind: input, shape index: {}]   ;;  %s846_s3 = inlined_call_operand.vmem [shape: f32[16,384], index: 3, kind: output, shape index: {}]  }
   0x1   :  { %s742_s14 = smov 0   ;;  %s744_s15 = smov 0  }
   0x2   :  { %s746_s16 = smov 0  }
   0x3 LB: > { %s22_s17 = sadd.s32 1, %s710_s15  ;;  %s574_s18 = sadd.s32 4294967295, %s714_s16   ;;  %s714_s16 = sphi %s746_s16, %s13_s16   ;;  %s710_s15 = sphi %s744_s15, %s851_s15   ;;  %s706_s14 = sphi %s742_s14, %s850_s14   ;;  %s702_s13 = sphi %s740_s13, %s849_s13   ;;  %s698_s12 = sphi %s738_s12, %s848_s12  }
   0x4   : > { %p23_p0 = scmp.ge.s32.totalorder %s22_s17, 3  ;;  %p65_p1 = scmp.ne.s32.totalorder %s702_s13, %s698_s12 }
   0x5   : > { %p66_p2 = scmp.eq.s32.totalorder %s714_s16, 0  ;;  %p123_p4 = scmp.eq.s32.totalorder %s574_s18, 2 }
   0x6   : > { %s853_s17 = smov (%p23_p0, %s22_s17), 0  ;;  %s58_s20 = sadd.s32 1, %s702_s13 }
   0x7   : > { %p67_p3 = por %p66_p2, %p65_p1  ;;  %s55_s19 = ssub.s32 %s710_s15, %s853_s17 }
   0x8   : > { %p56_p5 = scmp.eq.s32.totalorder %s55_s19, 0  ;;  %p773_p6 = por %p123_p4, %p65_p1 }
   0x9   : > { %p578_p7 = scmp.ge.s32.totalorder %s714_s16, 3 }
   0xa   : > { %s778_s22 = scalar_select %p56_p5, %s702_s13, %s58_s20  }
   0xb   : > { %154 = sbr.rel (%p578_p7) target bundleno = 32 (0x20), region = 20 }
  0x12   : > { %157 = sbr.rel (!%p67_p3) target bundleno = 32 (0x20), region = 24  ;;  %s159_s23 = sand.u32 (%p67_p3), 1, %s702_s13  }
  0x13   : > { %s580_s24 = sshll.u32 (%p67_p3), %s710_s15, 2  ;;  %s579_s25 = sshll.u32 (%p67_p3), %s159_s23, 6 }
  0x14   : > { %s786_s28 = scalar_lea.vmem (%p67_p3), %s844_s1, %s580_s24  ;;  %s161_s29 = scalar_lea.vmem (%p67_p3), [#allocation2], %s579_s25 }
  0x15   : > { %v179_v0 = vld [vmem:[%s786_s28] sm:$0xf] (%p67_p3)  ;;  %v181_v1 = vld [vmem:[%s786_s28 + $0xc] sm:$0xf] (%p67_p3)  ;;  %v183_v2 = vld [vmem:[%s786_s28 + $0x18] sm:$0xf] (%p67_p3) }
  0x16   : > { %180 = vst [vmem:[%s161_s29] sm:$0xf] (%p67_p3), %v179_v0  ;;  %182 = vst [vmem:[%s161_s29 + $0x4] sm:$0xf] (%p67_p3), %v181_v1  ;;  %v185_v3 = vld [vmem:[%s786_s28 + $0x24] sm:$0xf] (%p67_p3) }
  0x17   : > { %v187_v4 = vld [vmem:[%s786_s28 + $0x30] sm:$0xf] (%p67_p3)  ;;  %184 = vst [vmem:[%s161_s29 + $0x8] sm:$0xf] (%p67_p3), %v183_v2  ;;  %186 = vst [vmem:[%s161_s29 + $0xc] sm:$0xf] (%p67_p3), %v185_v3 }
  0x18   : > { %188 = vst [vmem:[%s161_s29 + $0x10] sm:$0xf] (%p67_p3), %v187_v4  ;;  %v189_v5 = vld [vmem:[%s786_s28 + $0x3c] sm:$0xf] (%p67_p3)  ;;  %v191_v6 = vld [vmem:[%s786_s28 + $0x48] sm:$0xf] (%p67_p3) }
  0x19   : > { %v193_v7 = vld [vmem:[%s786_s28 + $0x54] sm:$0xf]  ;;  %190 = vst [vmem:[%s161_s29 + $0x14] sm:$0xf] %v189_v5  ;;  %192 = vst [vmem:[%s161_s29 + $0x18] sm:$0xf] %v191_v6 }
  0x1a   : > { %194 = vst [vmem:[%s161_s29 + $0x1c] sm:$0xf] %v193_v7  ;;  %v195_v8 = vld [vmem:[%s786_s28 + $0x60] sm:$0xf]  ;;  %v197_v9 = vld [vmem:[%s786_s28 + $0x6c] sm:$0xf] }
  0x1b   : > { %v199_v10 = vld [vmem:[%s786_s28 + $0x78] sm:$0xf]  ;;  %196 = vst [vmem:[%s161_s29 + $0x20] sm:$0xf] %v195_v8  ;;  %198 = vst [vmem:[%s161_s29 + $0x24] sm:$0xf] %v197_v9 }
  0x1c   : > { %200 = vst [vmem:[%s161_s29 + $0x28] sm:$0xf] %v199_v10  ;;  %v201_v11 = vld [vmem:[%s786_s28 + $0x84] sm:$0xf]  ;;  %v203_v12 = vld [vmem:[%s786_s28 + $0x90] sm:$0xf] }
  0x1d   : > { %v205_v13 = vld [vmem:[%s786_s28 + $0x9c] sm:$0xf]  ;;  %202 = vst [vmem:[%s161_s29 + $0x2c] sm:$0xf] %v201_v11  ;;  %204 = vst [vmem:[%s161_s29 + $0x30] sm:$0xf] %v203_v12 }
  0x1e   : > { %206 = vst [vmem:[%s161_s29 + $0x34] sm:$0xf] %v205_v13  ;;  %v207_v14 = vld [vmem:[%s786_s28 + $0xa8] sm:$0xf]  ;;  %v209_v15 = vld [vmem:[%s786_s28 + $0xb4] sm:$0xf] }
  0x1f   : > { %208 = vst [vmem:[%s161_s29 + $0x38] sm:$0xf] %v207_v14  ;;  %210 = vst [vmem:[%s161_s29 + $0x3c] sm:$0xf] %v209_v15 }
  0x20 PF: > { %p581_p8 = scmp.ge.s32.totalorder %s714_s16, 1  ;;  %p270_p9 = scmp.lt.s32.totalorder %s714_s16, 4 }
  0x22   : > { %p271_p10 = pnand %p581_p8, %p270_p9 }
  0x23   : > { %s277_s30 = sand.u32 (!%p271_p10), 1, %s698_s12   ;;  %v716_v16 = vmov (!%p271_p10), 0.0   ;;  %vm717_vm0 = vmmov (!%p271_p10), 0   ;;  %v318_v25 = vld [vmem:[%s843_s0] sm:$0xff] (!%p271_p10)  ;;  %v319_v26 = vld [vmem:[%s843_s0 + $0x8] sm:$0xff] (!%p271_p10)  ;;  %p313_p11 = scmp.lt.s32.totalorder (!%p271_p10), %s706_s14, 2 }
  0x24   : > { %274 = sbr.rel (%p271_p10) target bundleno = 295 (0x127), region = 69  ;;  %606 = vmatprep.subr.bf16.mxu0 (!%p271_p10), %v716_v16  ;;  %s582_s4 = sshll.u32 (!%p271_p10), %s277_s30, 6  ;;  %622 = vmatprep.mubr.msk.bf16.mxu0 (!%p271_p10), %vm717_vm0, %v716_v16  ;;  %v320_v27 = vpack.c.bf16 (!%p271_p10), %v319_v26, %v318_v25 }
  0x25   : > { %s279_s5 = scalar_lea.vmem (!%p271_p10), [#allocation2], %s582_s4  ;;  %s583_s20 = sshll.u32 (!%p271_p10), %s277_s30, 4 }
  0x26   : > { %v668_v17 = vld [vmem:[%s279_s5] sm:$0xff] (!%p271_p10)   ;;  %v669_v18 = vld [vmem:[%s279_s5 + $0x8] sm:$0xff] (!%p271_p10)   ;;  %v670_v19 = vld [vmem:[%s279_s5 + $0x10] sm:$0xff] (!%p271_p10)   ;;  %s306_s23 = scalar_lea.vmem (!%p271_p10), [#allocation3], %s583_s20 }
  0x27   : > { %607 = vmatpush3.bf16.msra.mxu0 (!%p271_p10), %v668_v17  ;;  %v671_v20 = vld [vmem:[%s279_s5 + $0x18] sm:$0xff] (!%p271_p10)   ;;  %v672_v21 = vld [vmem:[%s279_s5 + $0x20] sm:$0xff] (!%p271_p10)   ;;  %v673_v22 = vld [vmem:[%s279_s5 + $0x28] sm:$0xff] (!%p271_p10)  }
  0x28   : > { %608 = vmatprep.subr.bf16.mxu0 (!%p271_p10), %v716_v16  ;;  %v674_v23 = vld [vmem:[%s279_s5 + $0x30] sm:$0xff] (!%p271_p10)   ;;  %v675_v24 = vld [vmem:[%s279_s5 + $0x38] sm:$0xff] (!%p271_p10)  }
  0x2b   : > { %609 = vmatpush3.bf16.msra.mxu0 %v669_v18  ;;  %s314_s10 = scalar_select %p313_p11, %s706_s14, 2 }
  0x2c   : > { %610 = vmatprep.subr.bf16.mxu0 %v716_v16  ;;  %s594_s24 = sshll.u32 (%p773_p6), %s706_s14, 3 }
  0x2d   : > { %s315_s19 = scalar_lea.vmem %s845_s2, %s314_s10  ;;  %s446_s26 = scalar_lea.vmem (%p773_p6), %s846_s3, %s594_s24 }
  0x2e   : > { %v584_v28 = vld [vmem:[%s315_s19] ss:$0 sm:$0xff] }
  0x2f   : > { %611 = vmatpush3.bf16.msra.mxu0 %v670_v19 }
  0x30   : > { %612 = vmatprep.subr.bf16.mxu0 %v716_v16 }
  0x33   : > { %613 = vmatpush3.bf16.msra.mxu0 %v671_v20 }
  0x34   : > { %614 = vmatprep.subr.bf16.mxu0 %v716_v16 }
  0x37   : > { %615 = vmatpush3.bf16.msra.mxu0 %v672_v21 }
  0x38   : > { %616 = vmatprep.subr.bf16.mxu0 %v716_v16 }
  0x3b   : > { %617 = vmatpush3.bf16.msra.mxu0 %v673_v22 }
  0x3c   : > { %618 = vmatprep.subr.bf16.mxu0 %v716_v16 }
  0x3f   : > { %619 = vmatpush3.bf16.msra.mxu0 %v674_v23 }
  0x40   : > { %620 = vmatprep.subr.bf16.mxu0 %v716_v16 }
  0x43   : > { %621 = vmatpush3.bf16.msra.mxu0 %v675_v24 }
  0x46   : > { %623 = vmatmul.mubr.bf16.vlgmr.msra.gmra.mrb[0].mxu0 %v320_v27 }
 0x118   : > { %441 = sbr.rel (!%p773_p6) target bundleno = 295 (0x127), region = 77 }
 0x119   : > { %v426_v29 = vpop.f32.mrb[0].mxu0 }
 0x11a   : > { %v427_v30 = vadd.f32 %v584_v28, %v426_v29  ;;  %v624_v31 = vpop.f32.mrb[1].mxu0 }
 0x11b   : > { %v429_v32 = vpop.f32.mrb[2].mxu0 }
 0x11c   : > { %433 = vst [vmem:[%s306_s23] sm:$0xff] %v427_v30  ;;  %v430_v33 = vadd.f32 %v584_v28, %v429_v32  ;;  %v625_v34 = vpop.f32.mrb[3].mxu0 }
 0x11e   : > { %434 = vst [vmem:[%s306_s23 + $0x8] sm:$0xff] %v430_v33 }
 0x123   : > { %v476_v35 = vld [vmem:[%s306_s23] sm:$0xff] }
 0x124   : > { %477 = vst [vmem:[%s446_s26] sm:$0xff] %v476_v35 }
 0x125   : > { %v478_v36 = vld [vmem:[%s306_s23 + $0x8] sm:$0xff] }
 0x126   : > { %479 = vst [vmem:[%s446_s26 + $0x18] sm:$0xff] %v478_v36 }
 0x127 PF: > { %s13_s16 = sadd.s32 1, %s714_s16   ;;  %s848_s12 = smov %s702_s13 }
 0x128   : > { %p10_p12 = scmp.ge.s32.totalorder %s13_s16, 5   ;;  %s849_s13 = smov %s778_s22 }
 0x129   : > { %s850_s14 = smov %s710_s15  ;;  %s851_s15 = smov %s853_s17 }
 0x12a   :  { %12 = sbr.rel (!%p10_p12) target bundleno = 3 (0x3), region = 152 }

// kernel: bert_forward.13
= control target key start
LH: loop header
LB: loop body
LE: loop exit
PB: predicated region body
PF: predicated region fallthrough
CT: control target
= control target key end

     0   :  { %v244_v0 = vmov 0.0   ;;  %vm245_vm0 = vmmov 0   ;;  %s332_s1 = inlined_call_operand.vmem [shape: bf16[128,128], index: 1, kind: input, shape index: {}]   ;;  %s333_s0 = inlined_call_operand.vmem [shape: f32[16,128], index: 0, kind: input, shape index: {}]   ;;  %s334_s2 = inlined_call_operand.vmem [shape: f32[1,128], index: 2, kind: input, shape index: {}]   ;;  %s335_s3 = inlined_call_operand.vmem [shape: f32[16,128], index: 3, kind: input, shape index: {}]   ;;  %s336_s4 = inlined_call_operand.vmem [shape: f32[1,128], index: 4, kind: input, shape index: {}]   ;;  %s337_s5 = inlined_call_operand.vmem [shape: f32[1,128], index: 5, kind: input, shape index: {}]   ;;  %s338_s6 = inlined_call_operand.vmem [shape: f32[16,128], index: 6, kind: output, shape index: {}]  }
   0x1   :  { %210 = vmatprep.subr.bf16.mxu0 %v244_v0  ;;  %v232_v1 = vld [vmem:[%s332_s1] sm:$0xff]   ;;  %226 = vmatprep.mubr.msk.bf16.mxu0 %vm245_vm0, %v244_v0  ;;  %v233_v2 = vld [vmem:[%s332_s1 + $0x8] sm:$0xff]   ;;  %v234_v3 = vld [vmem:[%s332_s1 + $0x10] sm:$0xff]  }
   0x2   :  { %211 = vmatpush3.bf16.msra.mxu0 %v232_v1  ;;  %v235_v4 = vld [vmem:[%s332_s1 + $0x18] sm:$0xff]   ;;  %v236_v5 = vld [vmem:[%s332_s1 + $0x20] sm:$0xff]   ;;  %v237_v6 = vld [vmem:[%s332_s1 + $0x28] sm:$0xff]  }
   0x3   :  { %212 = vmatprep.subr.bf16.mxu0 %v244_v0  ;;  %v238_v7 = vld [vmem:[%s332_s1 + $0x30] sm:$0xff]   ;;  %v239_v8 = vld [vmem:[%s332_s1 + $0x38] sm:$0xff]   ;;  %v24_v9 = vld [vmem:[%s333_s0] sm:$0xff] }
   0x4   :  { %v25_v10 = vld [vmem:[%s333_s0 + $0x8] sm:$0xff]  ;;  %v190_v12 = vld [vmem:[%s334_s2] ss:$0 sm:$0xff] }
   0x5   :  { %v26_v11 = vpack.c.bf16 %v25_v10, %v24_v9  ;;  %v139_v14 = vld [vmem:[%s335_s3] sm:$0xff]  ;;  %v140_v21 = vld [vmem:[%s335_s3 + $0x8] sm:$0xff] }
   0x6   :  { %213 = vmatpush3.bf16.msra.mxu0 %v233_v2  ;;  %v199_v38 = vld [vmem:[%s336_s4] ss:$0 sm:$0xff] }
   0x7   :  { %214 = vmatprep.subr.bf16.mxu0 %v244_v0  ;;  %v200_v40 = vld [vmem:[%s337_s5] ss:$0 sm:$0xff] }
   0xa   :  { %215 = vmatpush3.bf16.msra.mxu0 %v234_v3 }
   0xb   :  { %216 = vmatprep.subr.bf16.mxu0 %v244_v0 }
   0xe   :  { %217 = vmatpush3.bf16.msra.mxu0 %v235_v4 }
   0xf   :  { %218 = vmatprep.subr.bf16.mxu0 %v244_v0 }
  0x12   :  { %219 = vmatpush3.bf16.msra.mxu0 %v236_v5 }
  0x13   :  { %220 = vmatprep.subr.bf16.mxu0 %v244_v0 }
  0x16   :  { %221 = vmatpush3.bf16.msra.mxu0 %v237_v6 }
  0x17   :  { %222 = vmatprep.subr.bf16.mxu0 %v244_v0 }
  0x1a   :  { %223 = vmatpush3.bf16.msra.mxu0 %v238_v7 }
  0x1b   :  { %224 = vmatprep.subr.bf16.mxu0 %v244_v0 }
  0x1e   :  { %225 = vmatpush3.bf16.msra.mxu0 %v239_v8 }
  0x21   :  { %227 = vmatmul.mubr.bf16.vlgmr.msra.gmra.mrb[0].mxu0 %v26_v11 }
  0xf4   :  { %v132_v13 = vpop.f32.mrb[0].mxu0 }
  0xf5   :  { %v133_v15 = vadd.f32 %v190_v12, %v132_v13  ;;  %v228_v16 = vpop.f32.mrb[1].mxu0 }
  0xf6   :  { %v135_v17 = vpop.f32.mrb[2].mxu0 }
  0xf7   :  { %v136_v18 = vadd.f32 %v190_v12, %v135_v17  ;;  %v229_v19 = vpop.f32.mrb[3].mxu0  ;;  %v141_v20 = vadd.f32 %v139_v14, %v133_v15 }
  0xf9   :  { %145 = vadd.xlane.f32.xlu0 %v141_v20  ;;  %v142_v22 = vadd.f32 %v140_v21, %v136_v18 }
  0xfd   :  { %147 = vadd.xlane.f32.xlu0 %v142_v22 }
 0x186   :  { %v146_v23 = vpop.xlane.xlu0 %145 }
 0x187   :  { %v150_v24 = vmul.f32 0.0078125, %v146_v23 }
 0x189   :  { %v152_v25 = vsub.f32 %v141_v20, %v150_v24 }
 0x18a   :  { %v148_v26 = vpop.xlane.xlu0 %147 }
 0x18b   :  { %v151_v27 = vmul.f32 0.0078125, %v148_v26  ;;  %v154_v28 = vmul.f32 %v152_v25, %v152_v25 }
 0x18d   :  { %v153_v29 = vsub.f32 %v142_v22, %v151_v27  ;;  %156 = vadd.xlane.f32.xlu1 %v154_v28 }
 0x18f   :  { %v155_v30 = vmul.f32 %v153_v29, %v153_v29 }
 0x191   :  { %158 = vadd.xlane.f32.xlu1 %v155_v30 }
 0x21a   :  { %v157_v31 = vpop.xlane.xlu1 %156 }
 0x21b   :  { %v160_v32 = vmul.f32 0.0078125, %v157_v31 }
 0x21d   :  { %v162_v33 = vadd.f32 1e-12, %v160_v32 }
 0x21e   :  { %v159_v34 = vpop.xlane.xlu1 %158 }
 0x21f   :  { %240 = vrsqrt.f32 %v162_v33  ;;  %v161_v35 = vmul.f32 0.0078125, %v159_v34 }
 0x221   :  { %v163_v36 = vadd.f32 1e-12, %v161_v35 }
 0x223   :  { %242 = vrsqrt.f32 %v163_v36 }
 0x229   :  { %v241_v37 = vpop.eup %240 }
 0x22a   :  { %v166_v39 = vmul.f32 %v241_v37, %v152_v25 }
 0x22c   :  { %v174_v41 = vmul.f32 %v199_v38, %v166_v39 }
 0x22d   :  { %v243_v42 = vpop.eup %242 }
 0x22e   :  { %v182_v43 = vadd.f32 %v200_v40, %v174_v41  ;;  %v167_v44 = vmul.f32 %v243_v42, %v153_v29 }
 0x230   :  { %184 = vst [vmem:[%s338_s6] sm:$0xff] %v182_v43  ;;  %v175_v45 = vmul.f32 %v199_v38, %v167_v44 }
 0x232   :  { %v183_v46 = vadd.f32 %v200_v40, %v175_v45 }
 0x234   :  { %185 = vst [vmem:[%s338_s6 + $0x8] sm:$0xff] %v183_v46 }

// kernel: bert_forward.12
= control target key start
LH: loop header
LB: loop body
LE: loop exit
PB: predicated region body
PF: predicated region fallthrough
CT: control target
= control target key end

     0   :  { %s838_s9 = smov 0   ;;  %s944_s0 = inlined_call_operand.vmem [shape: f32[2,8,384], index: 0, kind: input, shape index: {}]   ;;  %s945_s1 = inlined_call_operand.vmem [shape: f32[2,1,8], index: 1, kind: input, shape index: {}]   ;;  %s946_s2 = inlined_call_operand.vmem [shape: f32[2,8,128], index: 2, kind: output, shape index: {}]  }
   0x1 LB: > { %s698_s10 = sadd.s32 4294967295, %s816_s9   ;;  %p702_p0 = scmp.ge.s32.totalorder %s816_s9, 1  ;;  %s816_s9 = sphi %s838_s9, %s12_s9  }
   0x2   : > { %p120_p1 = scmp.lt.s32.totalorder %s816_s9, 3 }
   0x4   : > { %p121_p2 = pnand %p702_p0, %p120_p1 }
   0x5   : > { %p144_p3 = scmp.lt.s32.totalorder (!%p121_p2), %s698_s10, 1  ;;  %v818_v0 = vmov (!%p121_p2), 0.0   ;;  %vm819_vm0 = vmmov (!%p121_p2), 0   ;;  %vm164_vm1 = vcmask (!%p121_p2), 261120   ;;  %vm219_vm2 = vcmask (!%p121_p2), 64512   ;;  %s820_s18 = smov (!%p121_p2), 96  }
   0x6   : > { %124 = sbr.rel (%p121_p2) target bundleno = 1482 (0x5ca), region = 28  ;;  %732 = vmatprep.subr.bf16.mxu0 (!%p121_p2), %v818_v0  ;;  %734 = vmatprep.mubr.msk.bf16.mxu0 (!%p121_p2), %vm819_vm0, %v818_v0  ;;  %s821_s19 = smov (!%p121_p2), 64   ;;  %vm235_vm3 = vcmask (!%p121_p2), 1043456   ;;  %vm631_vm4 = vcmask (!%p121_p2), 523264   ;;  %vm633_vm5 = vcmask (!%p121_p2), 785408  }
   0x7   : > { %738 = vmatprep.subr.bf16.mxu1 (!%p121_p2), %v818_v0  ;;  %740 = vmatprep.mubr.msk.bf16.mxu1 (!%p121_p2), %vm819_vm0, %v818_v0  ;;  %s822_s20 = smov (!%p121_p2), 32  }
   0xd   : > { %s948_s10 = smov (!%p144_p3, %s698_s10), 1 }
   0xe   : > { %s780_s11 = smul.u32 24, %s948_s10  ;;  %s151_s17 = scalar_lea.vmem %s945_s1, %s948_s10 }
   0xf   : > { %v871_v7 = vld [vmem:[%s151_s17] ss:$0 sm:$0xff]  ;;  %s704_s21 = sshll.u32 %s948_s10, 3 }
  0x10   : > { %s858_s14 = scalar_lea.vmem %s944_s0, %s780_s11  ;;  %s155_s24 = scalar_lea.vmem %s946_s2, %s704_s21 }
  0x11   : > { %v158_v1 = vld [vmem:[%s858_s14 + $0x8] sm:$0xff]  ;;  %v157_v4 = vld [vmem:[%s858_s14] sm:$0xff]  ;;  %v159_v19 = vld [vmem:[%s858_s14 + $0x10] sm:$0xff] }
  0x12   : > { %v161_v2 = vpack.c.bf16 %v158_v1, %v158_v1  ;;  %v160_v5 = vpack.c.bf16 %v157_v4, %v157_v4  ;;  %v882_v20 = vpack.c.bf16 %v159_v19, %v159_v19 }
  0x14   : > { %v169_v3 = vsel %vm164_vm1, %v161_v2, 0  ;;  %283 = vrot.lane.b32.xlu1 %v161_v2, %s820_s18  ;;  %v237_v21 = vsel %vm235_vm3, %v882_v20, 0 }
  0x15   : > { %733 = vmatpush3.bf16.xpose.msra.mxu0 %v169_v3  ;;  %739 = vmatpush3.bf16.msra.mxu1 %v237_v21 }
  0x16   : > { %750 = vmatprep.subr.bf16.mxu0 %v818_v0  ;;  %744 = vmatprep.subr.bf16.mxu1 %v818_v0 }
  0x18   : > { %280 = vrot.lane.b32.xlu1 %v160_v5, %s820_s18 }
  0x1c   : > { %735 = vmatmul.mubr.msk.bf16.vlgmr.msra.gmra.mrb[0].mxu0 %vm164_vm1, %v160_v5  ;;  %394 = vrot.lane.b32.xlu1 %v160_v5, %s821_s19 }
  0x1d   : > { %752 = vmatprep.mubr.msk.bf16.mxu0 %vm819_vm0, %v818_v0 }
  0x20   : > { %508 = vrot.lane.b32.xlu1 %v161_v2, %s822_s20 }
  0x24   : > { %506 = vrot.lane.b32.xlu1 %v160_v5, %s822_s20 }
  0x86   : > { %v284_v24 = vpop.permute.xlu1 %283 }
  0x87   : > { %v289_v26 = vsel %vm164_vm1, %v284_v24, 0 }
  0x8a   : > { %v281_v28 = vpop.permute.xlu1 %280 }
  0x8e   : > { %v395_v30 = vpop.permute.xlu1 %394 }
  0x92   : > { %v509_v32 = vpop.permute.xlu1 %508 }
  0x93   : > { %v514_v33 = vsel %vm164_vm1, %v509_v32, 0 }
  0x96   : > { %v507_v34 = vpop.permute.xlu1 %506 }
  0xef   : > { %v205_v6 = vpop.f32.mrb[0].mxu0 }
  0xf0   : > { %v211_v8 = vmul.f32 0.17677669, %v205_v6  ;;  %v736_v9 = vpop.f32.mrb[1].mxu0 }
  0xf1   : > { %v208_v10 = vpop.f32.mrb[2].mxu0 }
  0xf2   : > { %v737_v11 = vpop.f32.mrb[3].mxu0  ;;  %v218_v12 = vadd.f32 %v871_v7, %v211_v8 }
  0xf4   : > { %v220_v13 = vsel %vm219_vm2, %v218_v12, -inf }
  0xf5   : > { %221 = vmax.xlane.f32.xlu0 %v220_v13 }
 0x182   : > { %v222_v14 = vpop.xlane.xlu0 %221 }
 0x183   : > { %v223_v15 = vsub.f32 %v218_v12, %v222_v14 }
 0x185   : > { %v224_v16 = vmul.f32 1.442695, %v223_v15 }
 0x187   : > { %794 = vpow2.f32 %v224_v16 }
 0x191   : > { %v795_v17 = vpop.eup %794 }
 0x192   : > { %v226_v18 = vsel %vm219_vm2, %v795_v17, 0.0 }
 0x193   : > { %227 = vadd.xlane.f32.xlu0 %v226_v18 }
 0x1a9   : > { %396 = vrot.lane.b32.xlu0 %v161_v2, %s821_s19 }
 0x220   : > { %v228_v22 = vpop.xlane.xlu0 %227 }
 0x221   : > { %796 = vrcp.f32 %v228_v22 }
 0x224   : > { %v397_v29 = vpop.permute.xlu0 %396 }
 0x225   : > { %v402_v31 = vsel %vm164_vm1, %v397_v29, 0 }
 0x22b   : > { %v797_v23 = vpop.eup %796 }
 0x22c   : > { %v230_v25 = vmul.f32 %v797_v23, %v795_v17 }
 0x22e   : > { %v231_v27 = vpack.c.bf16 %v230_v25, %v230_v25 }
 0x230   : > { %741 = vmatmul.mubr.msk.bf16.vlgmr.msra.gmra.mrb[0].mxu1 %vm219_vm2, %v231_v27 }
 0x231   : > { %745 = vmatpush3.bf16.xpose.msra.mxu1 %v289_v26  ;;  %746 = vmatprep.mubr.msk.bf16.mxu1 %vm819_vm0, %v818_v0 }
 0x232   : > { %756 = vmatprep.subr.bf16.mxu1 %v818_v0 }
 0x238   : > { %747 = vmatmul.mubr.msk.bf16.vlgmr.msra.gmra.mrb[4].mxu1 %vm164_vm1, %v281_v28 }
 0x239   : > { %757 = vmatpush3.bf16.xpose.msra.mxu1 %v402_v31  ;;  %758 = vmatprep.mubr.msk.bf16.mxu1 %vm819_vm0, %v818_v0 }
 0x23a   : > { %768 = vmatprep.subr.bf16.mxu1 %v818_v0 }
 0x240   : > { %759 = vmatmul.mubr.msk.bf16.vlgmr.msra.gmra.mrb[8].mxu1 %vm164_vm1, %v395_v30 }
 0x241   : > { %769 = vmatpush3.bf16.xpose.msra.mxu1 %v514_v33  ;;  %770 = vmatprep.mubr.msk.bf16.mxu1 %vm819_vm0, %v818_v0 }
 0x248   : > { %771 = vmatmul.mubr.msk.bf16.vlgmr.msra.gmra.mrb[12].mxu1 %vm164_vm1, %v507_v34 }
 0x303   : > { %v903_v35 = vpop.f32.mrb[0].mxu1 }
 0x304   : > { %v742_v36 = vpop.f32.mrb[1].mxu1 }
 0x305   : > { %v276_v37 = vpop.f32.mrb[2].mxu1 }
 0x306   : > { %v743_v38 = vpop.f32.mrb[3].mxu1 }
 0x30b   : > { %v325_v39 = vpop.f32.mrb[4].mxu1 }
 0x30c   : > { %v331_v40 = vmul.f32 0.17677669, %v325_v39  ;;  %v748_v41 = vpop.f32.mrb[5].mxu1 }
 0x30d   : > { %v328_v42 = vpop.f32.mrb[6].mxu1 }
 0x30e   : > { %v749_v43 = vpop.f32.mrb[7].mxu1  ;;  %v332_v44 = vadd.f32 %v871_v7, %v331_v40 }
 0x310   : > { %v333_v45 = vsel %vm219_vm2, %v332_v44, -inf }
 0x311   : > { %334 = vmax.xlane.f32.xlu1 %v333_v45 }
 0x313   : > { %v438_v46 = vpop.f32.mrb[8].mxu1 }
 0x314   : > { %v444_v47 = vmul.f32 0.17677669, %v438_v46  ;;  %v760_v48 = vpop.f32.mrb[9].mxu1 }
 0x315   : > { %v441_v49 = vpop.f32.mrb[10].mxu1 }
 0x316   : > { %v445_v50 = vadd.f32 %v871_v7, %v444_v47  ;;  %v761_v51 = vpop.f32.mrb[11].mxu1 }
 0x318   : > { %v446_v52 = vsel %vm219_vm2, %v445_v50, -inf }
 0x319   : > { %447 = vmax.xlane.f32.xlu0 %v446_v52 }
 0x31b   : > { %v550_v53 = vpop.f32.mrb[12].mxu1 }
 0x31c   : > { %v556_v54 = vmul.f32 0.17677669, %v550_v53  ;;  %v772_v55 = vpop.f32.mrb[13].mxu1 }
 0x31d   : > { %v553_v56 = vpop.f32.mrb[14].mxu1 }
 0x31e   : > { %v557_v57 = vadd.f32 %v871_v7, %v556_v54  ;;  %v773_v58 = vpop.f32.mrb[15].mxu1 }
 0x320   : > { %v558_v59 = vsel %vm219_vm2, %v557_v57, -inf }
 0x321   : > { %559 = vmax.xlane.f32.xlu1 %v558_v59 }
 0x39e   : > { %v335_v60 = vpop.xlane.xlu1 %334 }
 0x39f   : > { %v336_v61 = vsub.f32 %v332_v44, %v335_v60 }
 0x3a1   : > { %v337_v62 = vmul.f32 1.442695, %v336_v61 }
 0x3a3   : > { %798 = vpow2.f32 %v337_v62 }
 0x3a6   : > { %v448_v63 = vpop.xlane.xlu0 %447 }
 0x3a7   : > { %v449_v1 = vsub.f32 %v445_v50, %v448_v63 }
 0x3a9   : > { %v450_v2 = vmul.f32 1.442695, %v449_v1 }
 0x3ab   : > { %800 = vpow2.f32 %v450_v2 }
 0x3ad   : > { %v799_v3 = vpop.eup %798 }
 0x3ae   : > { %v339_v4 = vsel %vm219_vm2, %v799_v3, 0.0  ;;  %v560_v7 = vpop.xlane.xlu1 %559 }
 0x3af   : > { %340 = vadd.xlane.f32.xlu1 %v339_v4  ;;  %v561_v8 = vsub.f32 %v557_v57, %v560_v7 }
 0x3b1   : > { %v562_v9 = vmul.f32 1.442695, %v561_v8 }
 0x3b3   : > { %802 = vpow2.f32 %v562_v9 }
 0x3b5   : > { %v801_v5 = vpop.eup %800 }
 0x3b6   : > { %v452_v6 = vsel %vm219_vm2, %v801_v5, 0.0 }
 0x3b7   : > { %453 = vadd.xlane.f32.xlu0 %v452_v6 }
 0x3bd   : > { %v803_v10 = vpop.eup %802 }
 0x3be   : > { %v564_v11 = vsel %vm219_vm2, %v803_v10, 0.0 }
 0x3c0   : > { %458 = vrot.lane.b32.xlu1 %v882_v20, %s821_s19 }
 0x3cd   : > { %346 = vrot.lane.b32.xlu0 %v882_v20, %s820_s18 }
 0x3e4   : > { %565 = vadd.xlane.f32.xlu1 %v564_v11 }
 0x3f5   : > { %570 = vrot.lane.b32.xlu1 %v882_v20, %s822_s20 }
 0x43c   : > { %v341_v12 = vpop.xlane.xlu1 %340 }
 0x43d   : > { %804 = vrcp.f32 %v341_v12 }
 0x440   : > { %v459_v18 = vpop.permute.xlu1 %458 }
 0x441   : > { %v464_v21 = vsel %vm235_vm3, %v459_v18, 0 }
 0x444   : > { %v454_v13 = vpop.xlane.xlu0 %453 }
 0x445   : > { %806 = vrcp.f32 %v454_v13 }
 0x447   : > { %v805_v14 = vpop.eup %804 }
 0x448   : > { %v343_v15 = vmul.f32 %v805_v14, %v799_v3  ;;  %v347_v16 = vpop.permute.xlu0 %346 }
 0x449   : > { %v352_v17 = vsel %vm235_vm3, %v347_v16, 0 }
 0x44a   : > { %751 = vmatpush3.bf16.msra.mxu0 %v352_v17  ;;  %v344_v19 = vpack.c.bf16 %v343_v15, %v343_v15 }
 0x44b   : > { %762 = vmatprep.subr.bf16.mxu0 %v818_v0 }
 0x44d   : > { %753 = vmatmul.mubr.msk.bf16.vlgmr.msra.gmra.mrb[4].mxu0 %vm219_vm2, %v344_v19 }
 0x44e   : > { %763 = vmatpush3.bf16.msra.mxu0 %v464_v21  ;;  %764 = vmatprep.mubr.msk.bf16.mxu0 %vm819_vm0, %v818_v0 }
 0x44f   : > { %v807_v20 = vpop.eup %806  ;;  %774 = vmatprep.subr.bf16.mxu0 %v818_v0 }
 0x450   : > { %v456_v22 = vmul.f32 %v807_v20, %v801_v5 }
 0x452   : > { %v457_v23 = vpack.c.bf16 %v456_v22, %v456_v22 }
 0x455   : > { %765 = vmatmul.mubr.msk.bf16.vlgmr.msra.gmra.mrb[8].mxu0 %vm219_vm2, %v457_v23 }
 0x456   : > { %776 = vmatprep.mubr.msk.bf16.mxu0 %vm819_vm0, %v818_v0 }
 0x471   : > { %v566_v24 = vpop.xlane.xlu1 %565 }
 0x472   : > { %808 = vrcp.f32 %v566_v24 }
 0x475   : > { %v571_v25 = vpop.permute.xlu1 %570 }
 0x476   : > { %v576_v26 = vsel %vm235_vm3, %v571_v25, 0 }
 0x477   : > { %775 = vmatpush3.bf16.msra.mxu0 %v576_v26 }
 0x47c   : > { %v809_v27 = vpop.eup %808 }
 0x47d   : > { %v568_v28 = vmul.f32 %v809_v27, %v803_v10 }
 0x47f   : > { %v569_v29 = vpack.c.bf16 %v568_v28, %v568_v28 }
 0x481   : > { %777 = vmatmul.mubr.msk.bf16.vlgmr.msra.gmra.mrb[12].mxu0 %vm219_vm2, %v569_v29 }
 0x520   : > { %v388_v30 = vpop.f32.mrb[4].mxu0 }
 0x521   : > { %619 = vrot.lane.b32.xlu0 %v388_v30, %s822_s20  ;;  %v754_v31 = vpop.f32.mrb[5].mxu0 }
 0x522   : > { %v391_v32 = vpop.f32.mrb[6].mxu0 }
 0x523   : > { %v755_v33 = vpop.f32.mrb[7].mxu0 }
 0x528   : > { %v500_v34 = vpop.f32.mrb[8].mxu0 }
 0x529   : > { %623 = vrot.lane.b32.xlu1 %v500_v34, %s821_s19  ;;  %v766_v0 = vpop.f32.mrb[9].mxu0 }
 0x52a   : > { %v503_v36 = vpop.f32.mrb[10].mxu0 }
 0x52b   : > { %v767_v37 = vpop.f32.mrb[11].mxu0 }
 0x554   : > { %v612_v38 = vpop.f32.mrb[12].mxu0 }
 0x555   : > { %627 = vrot.lane.b32.xlu0 %v612_v38, %s820_s18  ;;  %v778_v39 = vpop.f32.mrb[13].mxu0 }
 0x556   : > { %v615_v40 = vpop.f32.mrb[14].mxu0 }
 0x557   : > { %v779_v41 = vpop.f32.mrb[15].mxu0 }
 0x593   : > { %v620_v42 = vpop.permute.xlu0 %619 }
 0x594   : > { %v630_v44 = vsel %vm164_vm1, %v903_v35, %v620_v42 }
 0x59b   : > { %v624_v43 = vpop.permute.xlu1 %623 }
 0x59c   : > { %v632_v45 = vsel %vm631_vm4, %v630_v44, %v624_v43 }
 0x5c7   : > { %v628_v46 = vpop.permute.xlu0 %627 }
 0x5c8   : > { %v634_v47 = vsel %vm633_vm5, %v632_v45, %v628_v46 }
 0x5c9   : > { %635 = vst [vmem:[%s155_s24] sm:$0xff] %v634_v47 }
 0x5ca PF: > { %s12_s9 = sadd.s32 1, %s816_s9  }
 0x5cb   : > { %p9_p4 = scmp.ge.s32.totalorder %s12_s9, 4  }
 0x5cd   :  { %11 = sbr.rel (!%p9_p4) target bundleno = 1 (0x1), region = 61 }

// kernel: bert_forward.19
= control target key start
LH: loop header
LB: loop body
LE: loop exit
PB: predicated region body
PF: predicated region fallthrough
CT: control target
= control target key end

     0   :  { %v354_v0 = vmov 0.0   ;;  %vm355_vm0 = vmmov 0   ;;  %s446_s1 = inlined_call_operand.vmem [shape: bf16[128,128], index: 1, kind: input, shape index: {}]   ;;  %s447_s3 = inlined_call_operand.vmem [shape: bf16[128,128], index: 3, kind: input, shape index: {}]   ;;  %s448_s0 = inlined_call_operand.vmem [shape: f32[2,128], index: 0, kind: input, shape index: {}]   ;;  %s449_s2 = inlined_call_operand.vmem [shape: f32[1,128], index: 2, kind: input, shape index: {}]   ;;  %s450_s4 = inlined_call_operand.vmem [shape: f32[1,128], index: 4, kind: input, shape index: {}]   ;;  %s451_s5 = inlined_call_operand.vmem [shape: f32[2,128], index: 5, kind: output, shape index: {}]  }
   0x1   :  { %292 = vmatprep.subr.bf16.mxu0 %v354_v0  ;;  %v334_v1 = vld [vmem:[%s446_s1] sm:$0xff]   ;;  %308 = vmatprep.mubr.msk.bf16.mxu0 %vm355_vm0, %v354_v0  ;;  %v335_v2 = vld [vmem:[%s446_s1 + $0x8] sm:$0xff]   ;;  %v336_v3 = vld [vmem:[%s446_s1 + $0x10] sm:$0xff]  }
   0x2   :  { %312 = vmatprep.subr.bf16.mxu1 %v354_v0  ;;  %328 = vmatprep.mubr.msk.bf16.mxu1 %vm355_vm0, %v354_v0  ;;  %v342_v4 = vld [vmem:[%s447_s3] sm:$0xff]   ;;  %v337_v5 = vld [vmem:[%s446_s1 + $0x18] sm:$0xff]   ;;  %v343_v6 = vld [vmem:[%s447_s3 + $0x8] sm:$0xff]  }
   0x3   :  { %293 = vmatpush3.bf16.msra.mxu0 %v334_v1  ;;  %313 = vmatpush3.bf16.msra.mxu1 %v342_v4  ;;  %v338_v7 = vld [vmem:[%s446_s1 + $0x20] sm:$0xff]   ;;  %v344_v8 = vld [vmem:[%s447_s3 + $0x10] sm:$0xff]   ;;  %v339_v9 = vld [vmem:[%s446_s1 + $0x28] sm:$0xff]  }
   0x4   :  { %294 = vmatprep.subr.bf16.mxu0 %v354_v0  ;;  %314 = vmatprep.subr.bf16.mxu1 %v354_v0  ;;  %v345_v10 = vld [vmem:[%s447_s3 + $0x18] sm:$0xff]   ;;  %v340_v11 = vld [vmem:[%s446_s1 + $0x30] sm:$0xff]   ;;  %v21_v13 = vld [vmem:[%s448_s0] sm:$0x3] }
   0x5   :  { %v341_v12 = vld [vmem:[%s446_s1 + $0x38] sm:$0xff]   ;;  %v22_v14 = vpack.c.bf16 %v21_v13, %v21_v13  ;;  %v346_v15 = vld [vmem:[%s447_s3 + $0x20] sm:$0xff]   ;;  %v347_v16 = vld [vmem:[%s447_s3 + $0x28] sm:$0xff]  }
   0x6   :  { %v348_v17 = vld [vmem:[%s447_s3 + $0x30] sm:$0xff]   ;;  %v349_v18 = vld [vmem:[%s447_s3 + $0x38] sm:$0xff]   ;;  %v256_v19 = vld [vmem:[%s449_s2] ss:$0 sm:$0xff] }
   0x7   :  { %295 = vmatpush3.bf16.msra.mxu0 %v335_v2  ;;  %315 = vmatpush3.bf16.msra.mxu1 %v343_v6  ;;  %v265_v27 = vld [vmem:[%s450_s4] ss:$0 sm:$0xff] }
   0x8   :  { %296 = vmatprep.subr.bf16.mxu0 %v354_v0  ;;  %316 = vmatprep.subr.bf16.mxu1 %v354_v0 }
   0xb   :  { %297 = vmatpush3.bf16.msra.mxu0 %v336_v3  ;;  %317 = vmatpush3.bf16.msra.mxu1 %v344_v8 }
   0xc   :  { %298 = vmatprep.subr.bf16.mxu0 %v354_v0  ;;  %318 = vmatprep.subr.bf16.mxu1 %v354_v0 }
   0xf   :  { %299 = vmatpush3.bf16.msra.mxu0 %v337_v5  ;;  %319 = vmatpush3.bf16.msra.mxu1 %v345_v10 }
  0x10   :  { %300 = vmatprep.subr.bf16.mxu0 %v354_v0  ;;  %320 = vmatprep.subr.bf16.mxu1 %v354_v0 }
  0x13   :  { %301 = vmatpush3.bf16.msra.mxu0 %v338_v7  ;;  %321 = vmatpush3.bf16.msra.mxu1 %v346_v15 }
  0x14   :  { %302 = vmatprep.subr.bf16.mxu0 %v354_v0  ;;  %322 = vmatprep.subr.bf16.mxu1 %v354_v0 }
  0x17   :  { %303 = vmatpush3.bf16.msra.mxu0 %v339_v9  ;;  %323 = vmatpush3.bf16.msra.mxu1 %v347_v16 }
  0x18   :  { %304 = vmatprep.subr.bf16.mxu0 %v354_v0  ;;  %324 = vmatprep.subr.bf16.mxu1 %v354_v0 }
  0x1b   :  { %305 = vmatpush3.bf16.msra.mxu0 %v340_v11  ;;  %325 = vmatpush3.bf16.msra.mxu1 %v348_v17 }
  0x1c   :  { %306 = vmatprep.subr.bf16.mxu0 %v354_v0  ;;  %326 = vmatprep.subr.bf16.mxu1 %v354_v0 }
  0x1f   :  { %307 = vmatpush3.bf16.msra.mxu0 %v341_v12  ;;  %327 = vmatpush3.bf16.msra.mxu1 %v349_v18 }
  0x22   :  { %309 = vmatmul.mubr.bf16.vlgmr.msra.gmra.mrb[0].mxu0 %v22_v14 }
  0xf5   :  { %v128_v20 = vpop.f32.mrb[0].mxu0 }
  0xf6   :  { %v129_v21 = vadd.f32 %v256_v19, %v128_v20  ;;  %v310_v22 = vpop.f32.mrb[1].mxu0 }
  0xf7   :  { %v131_v23 = vpop.f32.mrb[2].mxu0 }
  0xf8   :  { %350 = vtanh.f32 %v129_v21  ;;  %v311_v24 = vpop.f32.mrb[3].mxu0 }
 0x102   :  { %v351_v25 = vpop.eup %350 }
 0x103   :  { %v135_v26 = vpack.c.bf16 %v351_v25, %v351_v25 }
 0x105   :  { %329 = vmatmul.mubr.bf16.vlgmr.msra.gmra.mrb[0].mxu1 %v135_v26 }
 0x1d8   :  { %v241_v28 = vpop.f32.mrb[0].mxu1 }
 0x1d9   :  { %v242_v29 = vadd.f32 %v265_v27, %v241_v28  ;;  %v330_v30 = vpop.f32.mrb[1].mxu1 }
 0x1da   :  { %v244_v31 = vpop.f32.mrb[2].mxu1 }
 0x1db   :  { %v247_v32 = vmul.f32 0.5, %v242_v29  ;;  %v331_v33 = vpop.f32.mrb[3].mxu1 }
 0x1dd   :  { %352 = vtanh.f32 %v247_v32 }
 0x1e7   :  { %v353_v34 = vpop.eup %352 }
 0x1e8   :  { %v249_v35 = vadd.f32 1.0, %v353_v34 }
 0x1ea   :  { %v250_v36 = vmul.f32 0.5, %v249_v35 }
 0x1ec   :  { %251 = vst [vmem:[%s451_s5] sm:$0x3] %v250_v36 }

// kernel: bert_forward.14
= control target key start
LH: loop header
LB: loop body
LE: loop exit
PB: predicated region body
PF: predicated region fallthrough
CT: control target
= control target key end

     0   :  { %v559_v1 = vmov 0   ;;  %v51_v36 = vlaneseq  ;;  %s731_s1 = inlined_call_operand.vmem [shape: bf16[128,256], index: 1, kind: input, shape index: {}]   ;;  %s732_s0 = inlined_call_operand.vmem [shape: f32[16,128], index: 0, kind: input, shape index: {}, may-alias: {0,5}]   ;;  %s733_s3 = inlined_call_operand.vmem [shape: bf16[256,128], index: 3, kind: input, shape index: {}]   ;;  %s734_s2 = inlined_call_operand.vmem [shape: f32[1,256], index: 2, kind: input, shape index: {}]   ;;  %s735_s4 = inlined_call_operand.vmem [shape: f32[1,128], index: 4, kind: input, shape index: {}]   ;;  %s736_s5 = inlined_call_operand.vmem [shape: f32[16,128], index: 5, kind: input, shape index: {}, may-alias: {0,5}]   ;;  %s737_s6 = inlined_call_operand.vmem [shape: f32[1,128], index: 6, kind: input, shape index: {}]   ;;  %s738_s7 = inlined_call_operand.vmem [shape: f32[1,128], index: 7, kind: input, shape index: {}]   ;;  %s739_s8 = inlined_call_operand.vmem [shape: f32[16,128], index: 8, kind: output, shape index: {}]  }
   0x1   :  { %v507_v0 = vld [vmem:[%s731_s1 + $0x4] ss:$8 sps:$4 sm:$0xff]   ;;  %173 = vmatprep.mubr.bf16.mxu0 %v559_v1  ;;  %v509_v2 = vld [vmem:[%s731_s1] ss:$8 sps:$4 sm:$0xff]   ;;  %v510_v3 = vld [vmem:[%s731_s1 + $0x14] ss:$8 sps:$4 sm:$0xff]  }
   0x2   :  { %141 = vmatprep.subr.bf16.mxu0 %v507_v0  ;;  %v512_v4 = vld [vmem:[%s731_s1 + $0x10] ss:$8 sps:$4 sm:$0xff]   ;;  %v513_v5 = vld [vmem:[%s731_s1 + $0x24] ss:$8 sps:$4 sm:$0xff]   ;;  %v515_v6 = vld [vmem:[%s731_s1 + $0x20] ss:$8 sps:$4 sm:$0xff]  }
   0x3   :  { %142 = vmatpush1.bf16.msra.mxu0 %v509_v2  ;;  %v516_v7 = vld [vmem:[%s731_s1 + $0x34] ss:$8 sps:$4 sm:$0xff]   ;;  %v518_v8 = vld [vmem:[%s731_s1 + $0x30] ss:$8 sps:$4 sm:$0xff]   ;;  %v519_v9 = vld [vmem:[%s731_s1 + $0x44] ss:$8 sps:$4 sm:$0xff]  }
   0x4   :  { %143 = vmatprep.subr.bf16.mxu0 %v510_v3  ;;  %v521_v10 = vld [vmem:[%s731_s1 + $0x40] ss:$8 sps:$4 sm:$0xff]   ;;  %v522_v11 = vld [vmem:[%s731_s1 + $0x54] ss:$8 sps:$4 sm:$0xff]   ;;  %v524_v12 = vld [vmem:[%s731_s1 + $0x50] ss:$8 sps:$4 sm:$0xff]  }
   0x5   :  { %v525_v13 = vld [vmem:[%s731_s1 + $0x64] ss:$8 sps:$4 sm:$0xff]   ;;  %v527_v14 = vld [vmem:[%s731_s1 + $0x60] ss:$8 sps:$4 sm:$0xff]   ;;  %v528_v15 = vld [vmem:[%s731_s1 + $0x74] ss:$8 sps:$4 sm:$0xff]  }
   0x6   :  { %v530_v16 = vld [vmem:[%s731_s1 + $0x70] ss:$8 sps:$4 sm:$0xff]   ;;  %v30_v17 = vld [vmem:[%s732_s0] sm:$0xff]  ;;  %v31_v18 = vld [vmem:[%s732_s0 + $0x8] sm:$0xff]  ;;  %v52_v37 = vshrl.u32 %v51_v36, 7 }
   0x7   :  { %144 = vmatpush1.bf16.msra.mxu0 %v512_v4  ;;  %v32_v19 = vpack.c.bf16 %v31_v18, %v30_v17  ;;  %v531_v20 = vld [vmem:[%s733_s3 + $0x40] sm:$0xff]   ;;  %v533_v22 = vld [vmem:[%s733_s3 + $0x48] sm:$0xff]   ;;  %v535_v24 = vld [vmem:[%s733_s3 + $0x50] sm:$0xff]  }
   0x8   :  { %145 = vmatprep.subr.bf16.mxu0 %v513_v5  ;;  %v532_v21 = vld [vmem:[%s733_s3] sm:$0xff]   ;;  %484 = vmatprep.subr.bf16.mxu1 %v531_v20  ;;  %v534_v23 = vld [vmem:[%s733_s3 + $0x8] sm:$0xff]   ;;  %v536_v25 = vld [vmem:[%s733_s3 + $0x10] sm:$0xff]   ;;  %v53_v38 = vsub.s32 0, %v52_v37  ;;  %v57_v40 = vsub.s32 1, %v52_v37 }
   0x9   :  { %485 = vmatpush3.bf16.msra.mxu1 %v532_v21  ;;  %v537_v26 = vld [vmem:[%s733_s3 + $0x58] sm:$0xff]   ;;  %v539_v28 = vld [vmem:[%s733_s3 + $0x60] sm:$0xff]   ;;  %v541_v30 = vld [vmem:[%s733_s3 + $0x68] sm:$0xff]  }
   0xa   :  { %486 = vmatprep.subr.bf16.mxu1 %v533_v22  ;;  %v538_v27 = vld [vmem:[%s733_s3 + $0x18] sm:$0xff]   ;;  %v540_v29 = vld [vmem:[%s733_s3 + $0x20] sm:$0xff]   ;;  %v542_v31 = vld [vmem:[%s733_s3 + $0x28] sm:$0xff]  }
   0xb   :  { %146 = vmatpush1.bf16.msra.mxu0 %v515_v6  ;;  %v543_v32 = vld [vmem:[%s733_s3 + $0x70] sm:$0xff]   ;;  %v545_v34 = vld [vmem:[%s733_s3 + $0x78] sm:$0xff]   ;;  %v49_v39 = vld [vmem:[%s734_s2] sm:$0x3] }
   0xc   :  { %147 = vmatprep.subr.bf16.mxu0 %v516_v7  ;;  %v544_v33 = vld [vmem:[%s733_s3 + $0x30] sm:$0xff]   ;;  %v546_v35 = vld [vmem:[%s733_s3 + $0x38] sm:$0xff]   ;;  %v54_v41 = vrot.slane %v49_v39, %v53_v38  ;;  %v58_v42 = vrot.slane %v49_v39, %v57_v40  ;;  %v399_v36 = vld [vmem:[%s736_s5 + $0x8] sm:$0xff] }
   0xd   :  { %487 = vmatpush3.bf16.msra.mxu1 %v534_v23 }
   0xe   :  { %488 = vmatprep.subr.bf16.mxu1 %v535_v24 }
   0xf   :  { %148 = vmatpush1.bf16.msra.mxu0 %v518_v8 }
  0x10   :  { %149 = vmatprep.subr.bf16.mxu0 %v519_v9 }
  0x11   :  { %489 = vmatpush3.bf16.msra.mxu1 %v536_v25 }
  0x12   :  { %490 = vmatprep.subr.bf16.mxu1 %v537_v26  ;;  %v465_v26 = vld [vmem:[%s735_s4] ss:$0 sm:$0xff] }
  0x13   :  { %150 = vmatpush1.bf16.msra.mxu0 %v521_v10 }
  0x14   :  { %151 = vmatprep.subr.bf16.mxu0 %v522_v11 }
  0x15   :  { %491 = vmatpush3.bf16.msra.mxu1 %v538_v27 }
  0x16   :  { %492 = vmatprep.subr.bf16.mxu1 %v539_v28 }
  0x17   :  { %152 = vmatpush1.bf16.msra.mxu0 %v524_v12 }
  0x18   :  { %153 = vmatprep.subr.bf16.mxu0 %v525_v13 }
  0x19   :  { %493 = vmatpush3.bf16.msra.mxu1 %v540_v29 }
  0x1a   :  { %494 = vmatprep.subr.bf16.mxu1 %v541_v30 }
  0x1b   :  { %154 = vmatpush1.bf16.msra.mxu0 %v527_v14 }
  0x1c   :  { %155 = vmatprep.subr.bf16.mxu0 %v528_v15 }
  0x1d   :  { %495 = vmatpush3.bf16.msra.mxu1 %v542_v31  ;;  %v398_v31 = vld [vmem:[%s736_s5] sm:$0xff] }
  0x1e   :  { %496 = vmatprep.subr.bf16.mxu1 %v543_v32 }
  0x1f   :  { %156 = vmatpush1.bf16.msra.mxu0 %v530_v16 }
  0x21   :  { %497 = vmatpush3.bf16.msra.mxu1 %v544_v33 }
  0x22   :  { %174 = vmatmul.mubr.bf16.vlgmr.msra.gmra.mrb[0].mxu0 %v32_v19  ;;  %498 = vmatprep.subr.bf16.mxu1 %v545_v34 }
  0x25   :  { %499 = vmatpush3.bf16.msra.mxu1 %v546_v35 }
  0xf5   :  { %v175_v43 = vpop.f32.mrb[0].mxu0 }
  0xf6   :  { %v176_v44 = vadd.f32 %v175_v43, %v54_v41  ;;  %v177_v45 = vpop.f32.mrb[1].mxu0 }
  0xf7   :  { %v178_v46 = vadd.f32 %v177_v45, %v58_v42  ;;  %v179_v47 = vpop.f32.mrb[2].mxu0 }
  0xf8   :  { %v188_v48 = vmul.f32 0.044715, %v176_v44  ;;  %v180_v49 = vadd.f32 %v179_v47, %v54_v41  ;;  %v181_v50 = vpop.f32.mrb[3].mxu0  ;;  %v184_v13 = vmul.f32 0.5, %v176_v44 }
  0xf9   :  { %v189_v51 = vmul.f32 0.044715, %v178_v46  ;;  %v182_v52 = vadd.f32 %v181_v50, %v58_v42  ;;  %v185_v16 = vmul.f32 0.5, %v178_v46 }
  0xfa   :  { %v192_v53 = vmul.f32 %v188_v48, %v176_v44  ;;  %v190_v54 = vmul.f32 0.044715, %v180_v49  ;;  %v186_v14 = vmul.f32 0.5, %v180_v49 }
  0xfb   :  { %v191_v55 = vmul.f32 0.044715, %v182_v52  ;;  %v193_v56 = vmul.f32 %v189_v51, %v178_v46  ;;  %v187_v17 = vmul.f32 0.5, %v182_v52 }
  0xfc   :  { %v196_v57 = vmul.f32 %v192_v53, %v176_v44  ;;  %v194_v58 = vmul.f32 %v190_v54, %v180_v49  ;;  %v482_v53 = vld [vmem:[%s737_s6] ss:$0 sm:$0xff] }
  0xfd   :  { %v195_v59 = vmul.f32 %v191_v55, %v182_v52  ;;  %v197_v60 = vmul.f32 %v193_v56, %v178_v46  ;;  %v483_v55 = vld [vmem:[%s738_s7] ss:$0 sm:$0xff] }
  0xfe   :  { %v198_v61 = vmul.f32 %v194_v58, %v180_v49  ;;  %v200_v62 = vadd.f32 %v196_v57, %v176_v44 }
  0xff   :  { %v199_v63 = vmul.f32 %v195_v59, %v182_v52  ;;  %v201_v0 = vadd.f32 %v197_v60, %v178_v46 }
 0x100   :  { %v202_v1 = vadd.f32 %v198_v61, %v180_v49  ;;  %v204_v2 = vmul.f32 0.7978846, %v200_v62 }
 0x101   :  { %v203_v3 = vadd.f32 %v199_v63, %v182_v52  ;;  %v205_v4 = vmul.f32 0.7978846, %v201_v0 }
 0x102   :  { %v206_v5 = vmul.f32 0.7978846, %v202_v1  ;;  %547 = vtanh.f32 %v204_v2 }
 0x103   :  { %v207_v6 = vmul.f32 0.7978846, %v203_v3  ;;  %549 = vtanh.f32 %v205_v4 }
 0x104   :  { %551 = vtanh.f32 %v206_v5 }
 0x105   :  { %553 = vtanh.f32 %v207_v6 }
 0x10c   :  { %v548_v7 = vpop.eup %547 }
 0x10d   :  { %v550_v8 = vpop.eup %549  ;;  %v212_v9 = vadd.f32 1.0, %v548_v7 }
 0x10e   :  { %v552_v10 = vpop.eup %551  ;;  %v213_v11 = vadd.f32 1.0, %v550_v8 }
 0x10f   :  { %v554_v12 = vpop.eup %553  ;;  %v214_v15 = vadd.f32 1.0, %v552_v10  ;;  %v216_v19 = vmul.f32 %v212_v9, %v184_v13 }
 0x110   :  { %v215_v18 = vadd.f32 1.0, %v554_v12  ;;  %v217_v21 = vmul.f32 %v213_v11, %v185_v16 }
 0x111   :  { %v218_v20 = vmul.f32 %v214_v15, %v186_v14 }
 0x112   :  { %v219_v22 = vmul.f32 %v215_v18, %v187_v17 }
 0x113   :  { %v220_v23 = vpack.c.bf16 %v218_v20, %v216_v19 }
 0x114   :  { %v221_v24 = vpack.c.bf16 %v219_v22, %v217_v21 }
 0x116   :  { %389 = vmatprep.mubr.bf16.mxu1 %v221_v24 }
 0x117   :  { %390 = vmatmul.mubr.bf16.vlgmr.msra.gmra.mrb[0].mxu1 %v220_v23 }
 0x1ea   :  { %v500_v25 = vpop.f32.mrb[0].mxu1 }
 0x1eb   :  { %v501_v27 = vpop.f32.mrb[1].mxu1 }
 0x1ec   :  { %v502_v28 = vadd.f32 %v501_v27, %v500_v25  ;;  %v503_v29 = vpop.f32.mrb[2].mxu1 }
 0x1ed   :  { %v504_v30 = vpop.f32.mrb[3].mxu1 }
 0x1ee   :  { %v392_v32 = vadd.f32 %v502_v28, %v465_v26  ;;  %v505_v33 = vadd.f32 %v504_v30, %v503_v29 }
 0x1f0   :  { %v395_v34 = vadd.f32 %v505_v33, %v465_v26  ;;  %v400_v35 = vadd.f32 %v398_v31, %v392_v32 }
 0x1f2   :  { %404 = vadd.xlane.f32.xlu0 %v400_v35  ;;  %v401_v37 = vadd.f32 %v399_v36, %v395_v34 }
 0x1f6   :  { %406 = vadd.xlane.f32.xlu0 %v401_v37 }
 0x27f   :  { %v405_v38 = vpop.xlane.xlu0 %404 }
 0x280   :  { %v409_v39 = vmul.f32 0.0078125, %v405_v38 }
 0x282   :  { %v411_v40 = vsub.f32 %v400_v35, %v409_v39 }
 0x283   :  { %v407_v41 = vpop.xlane.xlu0 %406 }
 0x284   :  { %v410_v42 = vmul.f32 0.0078125, %v407_v41  ;;  %v413_v43 = vmul.f32 %v411_v40, %v411_v40 }
 0x286   :  { %v412_v44 = vsub.f32 %v401_v37, %v410_v42  ;;  %415 = vadd.xlane.f32.xlu1 %v413_v43 }
 0x288   :  { %v414_v45 = vmul.f32 %v412_v44, %v412_v44 }
 0x28a   :  { %417 = vadd.xlane.f32.xlu1 %v414_v45 }
 0x313   :  { %v416_v46 = vpop.xlane.xlu1 %415 }
 0x314   :  { %v419_v47 = vmul.f32 0.0078125, %v416_v46 }
 0x316   :  { %v421_v48 = vadd.f32 1e-12, %v419_v47 }
 0x317   :  { %v418_v49 = vpop.xlane.xlu1 %417 }
 0x318   :  { %555 = vrsqrt.f32 %v421_v48  ;;  %v420_v50 = vmul.f32 0.0078125, %v418_v49 }
 0x31a   :  { %v422_v51 = vadd.f32 1e-12, %v420_v50 }
 0x31c   :  { %557 = vrsqrt.f32 %v422_v51 }
 0x322   :  { %v556_v52 = vpop.eup %555 }
 0x323   :  { %v425_v54 = vmul.f32 %v556_v52, %v411_v40 }
 0x325   :  { %v433_v56 = vmul.f32 %v482_v53, %v425_v54 }
 0x326   :  { %v558_v57 = vpop.eup %557 }
 0x327   :  { %v441_v58 = vadd.f32 %v483_v55, %v433_v56  ;;  %v426_v59 = vmul.f32 %v558_v57, %v412_v44 }
 0x329   :  { %443 = vst [vmem:[%s739_s8] sm:$0xff] %v441_v58  ;;  %v434_v60 = vmul.f32 %v482_v53, %v426_v59 }
 0x32b   :  { %v442_v61 = vadd.f32 %v483_v55, %v434_v60 }
 0x32d   :  { %444 = vst [vmem:[%s739_s8 + $0x8] sm:$0xff] %v442_v61 }

</bundles_post_ra>
